<compile_context>
chip_gen: v7x
topology: tpu7x:2x2x1
jax: 0.10.0
libtpu: 0.0.40
codegen_flags: <defaults>
</compile_context>

<pallas_src>
import functools

import jax
import jax.numpy as jnp
from jax.experimental import pallas as pl
from jax.experimental.pallas import tpu as pltpu

# ----------------------------- config (small, consistent with the module) ----
FEATURE_SIZE = 32
EMBEDDING_SIZE = 64
HIDDEN_SIZE = 128
NUM_HEADS = 4
HEAD_DIM = HIDDEN_SIZE // NUM_HEADS
INTERMEDIATE_SIZE = 256
NUM_HIDDEN_LAYERS = 2      # applied twice with shared weights (1 group, 1 inner layer)
LAYER_NORM_EPS = 1e-12

BATCH = 2
SEQ = 8

# Target LHS rows per grid step for the dense matmuls (MXU is 256 wide on v6e/v7x).
_TARGET_ROWS = 256


# ----------------------------- in-kernel helpers -----------------------------
def _gelu_new(x):
    # 0.5 * x * (1 + tanh(sqrt(2/pi) * (x + 0.044715 * x^3)))
    return 0.5 * x * (1.0 + jnp.tanh(0.7978845608028654 * (x + 0.044715 * x * x * x)))


def _layer_norm(x, g, b, eps):
    mu = jnp.mean(x, axis=-1, keepdims=True)
    var = jnp.mean((x - mu) * (x - mu), axis=-1, keepdims=True)
    return (x - mu) * jax.lax.rsqrt(var + eps) * g + b


def _elu_plus_one(x):
    # elu(x) + 1  ==  x + 1 (x > 0) ; exp(x) (x <= 0)
    return jnp.where(x > 0, x + 1.0, jnp.exp(x))


# ----------------------------- fused forward kernel --------------------------
def _oskar_fwd_kernel(*refs, seqs, seq_len, num_layers, eps, has_mask, bias_layout):
    x_ref = refs[0]
    i = 1
    m_ref = None
    if has_mask:
        m_ref = refs[i]
        i += 1
    (emb_w, map_w, wqkv, wd, wf, wfo, dec0_w, dec1_w,
     hmask_f32, hmask_bf16, bias) = refs[i:i + 11]
    o_ref = refs[i + 11]

    H = HIDDEN_SIZE
    R = seqs * seq_len
    bf16 = jnp.bfloat16
    f32 = jnp.float32

    def bvec(name):
        # static, 128-lane-aligned slice of the packed bias/LayerNorm slab
        off, size = bias_layout[name]
        return bias[:, off:off + size]

    # ---- embedder + embedding->hidden mapping (flat over the block's Bt*S rows) ----
    h = jnp.tanh(jnp.dot(x_ref[...].astype(bf16), emb_w[...],
                         preferred_element_type=f32) + bvec("emb_b"))
    h = jnp.dot(h.astype(bf16), map_w[...], preferred_element_type=f32) + bvec("map_b")

    # ---- encoder: ALBERT-style weight-shared layers (static unroll) ----------------
    for _ in range(num_layers):
        qkv = jnp.dot(h.astype(bf16), wqkv[...],
                      preferred_element_type=f32) + bvec("bqkv")        # (R, 3H)
        q = _elu_plus_one(qkv[:, :H])          # 128-lane aligned slices
        k = _elu_plus_one(qkv[:, H:2 * H])
        v = qkv[:, 2 * H:]
        if has_mask:
            k = k * m_ref[...]                 # multiplicative 0/1 validity mask (lane-dense)

        # Per-sequence views for the only inherently per-sequence pieces.
        q3 = q.reshape(seqs, seq_len, H)
        k3 = k.reshape(seqs, seq_len, H)
        v3 = v.reshape(seqs, seq_len, H)

        # Linear attention, all heads at once via the block-diagonal head mask:
        #   ctx_b   = k_b^T v_b                (H,H); same-head (d,d) blocks on the diag
        #   out_b   = q_b @ (ctx_b * blockdiag)
        #   denom   = (q * ksum) @ blockdiag   -- flat matmul over ALL Bt*S rows
        ctx3 = jnp.einsum('bsd,bse->bde', k3.astype(bf16), v3.astype(bf16),
                          preferred_element_type=f32)                    # (Bt, H, H)
        ctxm = (ctx3 * hmask_f32[...]).astype(bf16)
        context = jnp.einsum('bsd,bde->bse', q3.astype(bf16), ctxm,
                             preferred_element_type=f32).reshape(R, H)   # (R, H)

        ksum3 = jnp.sum(k3, axis=1, keepdims=True)                       # (Bt, 1, H)
        qks = (q3 * ksum3).reshape(R, H)
        denom = jnp.dot(qks.astype(bf16), hmask_bf16[...],
                        preferred_element_type=f32) + 1e-30              # (R, H)

        inv = pl.reciprocal(denom, approx=True)         # EUP
        inv = inv * (2.0 - denom * inv)                 # one Newton step -> ~f32 accuracy
        context = context * inv

        # attention output projection + residual LayerNorm
        proj = jnp.dot(context.astype(bf16), wd[...],
                       preferred_element_type=f32) + bvec("bd")
        attn = _layer_norm(h + proj, bvec("ln1_g"), bvec("ln1_b"), eps)

        # feed-forward + residual LayerNorm
        ff = _gelu_new(jnp.dot(attn.astype(bf16), wf[...],
                               preferred_element_type=f32) + bvec("bf"))
        ff = jnp.dot(ff.astype(bf16), wfo[...], preferred_element_type=f32) + bvec("bfo")
        h = _layer_norm(ff + attn, bvec("ln2_g"), bvec("ln2_b"), eps)

    # ---- decoder head on the first token of each sequence ---------------------------
    h0 = h.reshape(seqs, seq_len, H)[:, 0, :]                            # (Bt, H)
    d0 = jnp.tanh(jnp.dot(h0.astype(bf16), dec0_w[...],
                          preferred_element_type=f32) + bvec("dec0_b"))  # (Bt, H)
    val = jnp.dot(d0.astype(bf16), dec1_w[...],
                  preferred_element_type=f32) + bvec("dec1_b")           # (Bt, 1)
    o_ref[...] = val


# ----------------------------- parameters ------------------------------------
def init_params(key):
    """Deterministic init matching Oskar._init_weights: W ~ N(0,0.02), b=0, LN=(1,0)."""
    ks = jax.random.split(key, 10)

    def w(k, i, o):
        return 0.02 * jax.random.normal(k, (i, o), jnp.float32)

    zeros = lambda o: jnp.zeros((1, o), jnp.float32)
    ones = lambda o: jnp.ones((1, o), jnp.float32)

    wq = w(ks[0], HIDDEN_SIZE, HIDDEN_SIZE)
    wk = w(ks[1], HIDDEN_SIZE, HIDDEN_SIZE)
    wv = w(ks[2], HIDDEN_SIZE, HIDDEN_SIZE)
    layer = {
        "wqkv": jnp.concatenate([wq, wk, wv], axis=1),   # fused QKV weight (H, 3H)
        "bqkv": zeros(3 * HIDDEN_SIZE),
        "wd": w(ks[3], HIDDEN_SIZE, HIDDEN_SIZE), "bd": zeros(HIDDEN_SIZE),
        "ln1_g": ones(HIDDEN_SIZE), "ln1_b": zeros(HIDDEN_SIZE),
        "wf": w(ks[4], HIDDEN_SIZE, INTERMEDIATE_SIZE), "bf": zeros(INTERMEDIATE_SIZE),
        "wfo": w(ks[5], INTERMEDIATE_SIZE, HIDDEN_SIZE), "bfo": zeros(HIDDEN_SIZE),
        "ln2_g": ones(HIDDEN_SIZE), "ln2_b": zeros(HIDDEN_SIZE),
    }
    return {
        "emb_w": w(ks[6], FEATURE_SIZE, EMBEDDING_SIZE), "emb_b": zeros(EMBEDDING_SIZE),
        "map_w": w(ks[7], EMBEDDING_SIZE, HIDDEN_SIZE), "map_b": zeros(HIDDEN_SIZE),
        "layer": layer,
        "dec0_w": w(ks[8], HIDDEN_SIZE, HIDDEN_SIZE), "dec0_b": zeros(HIDDEN_SIZE),
        "dec1_w": w(ks[9], HIDDEN_SIZE, 1),            # kept as an (H, 1) column
        "dec1_b": zeros(1),
    }


def _pack_params(params):
    """bf16 matmul weights, precomputed block-diag head mask, packed f32 bias slab."""
    p = params["layer"]
    bf16 = jnp.bfloat16
    weights = {
        "emb_w": params["emb_w"].astype(bf16),
        "map_w": params["map_w"].astype(bf16),
        "wqkv": p["wqkv"].astype(bf16),
        "wd": p["wd"].astype(bf16),
        "wf": p["wf"].astype(bf16),
        "wfo": p["wfo"].astype(bf16),
        "dec0_w": params["dec0_w"].astype(bf16),
        "dec1_w": params["dec1_w"].astype(bf16),
    }

    # (H, H) block-diagonal head mask: 1 where row/col belong to the same head.
    head_id = jnp.arange(HIDDEN_SIZE, dtype=jnp.int32) // HEAD_DIM
    hmask = (head_id[:, None] == head_id[None, :]).astype(jnp.float32)

    # One packed (1, K) f32 slab for all biases / LayerNorm params; every segment
    # starts at a 128-lane-aligned offset so in-kernel slices stay cheap.
    layout = {}
    segs = []
    cursor = 0

    def add(name, vec):
        nonlocal cursor
        v = vec.reshape(1, -1).astype(jnp.float32)
        n = v.shape[1]
        layout[name] = (cursor, n)
        pad = (-n) % 128
        segs.append(v)
        if pad:
            segs.append(jnp.zeros((1, pad), jnp.float32))
        cursor += n + pad

    add("emb_b", params["emb_b"]); add("map_b", params["map_b"])
    add("bqkv", p["bqkv"]);        add("bd", p["bd"])
    add("ln1_g", p["ln1_g"]);      add("ln1_b", p["ln1_b"])
    add("bf", p["bf"]);            add("bfo", p["bfo"])
    add("ln2_g", p["ln2_g"]);      add("ln2_b", p["ln2_b"])
    add("dec0_b", params["dec0_b"]); add("dec1_b", params["dec1_b"])
    slab = jnp.concatenate(segs, axis=1)
    return weights, hmask, slab, layout


# ----------------------------- full forward ----------------------------------
def oskar_forward(params, x, mask=None, seqs_per_block=None):
    """Entire Oskar forward as a single pallas_call; grid iterates over sequence blocks."""
    B, S, F = x.shape
    has_mask = mask is not None

    if seqs_per_block is None:
        seqs_per_block = max(1, _TARGET_ROWS // S)
    Bt = max(1, min(int(seqs_per_block), B))     # sequences per grid step
    G = pl.cdiv(B, Bt)                           # grid size (1 for the tiny test batch)
    Bpad = G * Bt

    weights, hmask, slab, layout = _pack_params(params)

    xg = x.astype(jnp.float32)
    if Bpad != B:
        xg = jnp.concatenate([xg, jnp.zeros((Bpad - B, S, F), jnp.float32)], axis=0)
    xg = xg.reshape(G, Bt * S, F)

    in_specs = [pl.BlockSpec((None, Bt * S, F), lambda g: (g, 0, 0))]
    args = [xg]

    if has_mask:
        # TODO(synk): the reference converts the mask to an additive (1-mask)*-1e9 form and
        # then *multiplies* keys by it (which zeroes every key / NaNs even for the default
        # all-ones mask); we apply the raw 0/1 validity mask multiplicatively to keys — the
        # intended masked linear-attention semantics, identical for mask=ones.
        m = mask.astype(jnp.float32).reshape(B, S)
        m = jnp.broadcast_to(m[:, :, None], (B, S, HIDDEN_SIZE))   # lane-dense mask
        if Bpad != B:
            m = jnp.concatenate(
                [m, jnp.zeros((Bpad - B, S, HIDDEN_SIZE), jnp.float32)], axis=0)
        m = m.reshape(G, Bt * S, HIDDEN_SIZE)
        in_specs.append(pl.BlockSpec((None, Bt * S, HIDDEN_SIZE), lambda g: (g, 0, 0)))
        args.append(m)

    wt_args = (weights["emb_w"], weights["map_w"], weights["wqkv"], weights["wd"],
               weights["wf"], weights["wfo"], weights["dec0_w"], weights["dec1_w"],
               hmask, hmask.astype(jnp.bfloat16), slab)
    for w in wt_args:                            # all weight inputs are 2-D, constant index
        in_specs.append(pl.BlockSpec(w.shape, lambda g: (0, 0)))
    args.extend(wt_args)

    kernel = functools.partial(
        _oskar_fwd_kernel, seqs=Bt, seq_len=S, num_layers=NUM_HIDDEN_LAYERS,
        eps=LAYER_NORM_EPS, has_mask=has_mask, bias_layout=layout)

    out = pl.pallas_call(
        kernel,
        out_shape=jax.ShapeDtypeStruct((G, Bt, 1), jnp.float32),
        grid=(G,),
        in_specs=in_specs,
        out_specs=pl.BlockSpec((None, Bt, 1), lambda g: (g, 0, 0)),
        compiler_params=pltpu.CompilerParams(dimension_semantics=("parallel",)),
    )(*args)
    return out.reshape(Bpad)[:B]                 # (B,), squeeze(-1)
    # TODO(synk): MSE-loss branch (y is not None) and the Longformer sliding-window
    # branch (attention_band is not None) are not implemented; inference linear-attn only.


if __name__ == "__main__":
    key = jax.random.PRNGKey(0)
    pkey, xkey = jax.random.split(key)
    params = init_params(pkey)
    x = jax.random.normal(xkey, (BATCH, SEQ, FEATURE_SIZE), jnp.float32)

    out = jax.jit(oskar_forward)(params, x)
    out = jax.block_until_ready(out)
    assert out.shape == (BATCH,) and bool(jnp.all(jnp.isfinite(out)))
    print("KERNEL_OK")
</pallas_src>

<mosaic_0001>
module attributes {stable_mosaic.version = 11 : i64} {
  func.func @_oskar_fwd_kernel(%arg0: i32, %arg1: memref<1x16x32xf32, #tpu.memory_space<vmem>>, %arg2: memref<32x64xbf16, #tpu.memory_space<vmem>>, %arg3: memref<64x128xbf16, #tpu.memory_space<vmem>>, %arg4: memref<128x384xbf16, #tpu.memory_space<vmem>>, %arg5: memref<128x128xbf16, #tpu.memory_space<vmem>>, %arg6: memref<128x256xbf16, #tpu.memory_space<vmem>>, %arg7: memref<256x128xbf16, #tpu.memory_space<vmem>>, %arg8: memref<128x128xbf16, #tpu.memory_space<vmem>>, %arg9: memref<128x1xbf16, #tpu.memory_space<vmem>>, %arg10: memref<128x128xf32, #tpu.memory_space<vmem>>, %arg11: memref<128x128xbf16, #tpu.memory_space<vmem>>, %arg12: memref<1x1920xf32, #tpu.memory_space<vmem>>, %arg13: memref<1x2x1xf32, #tpu.memory_space<vmem>>) attributes {dimension_semantics = [#tpu.dimension_semantics<parallel>], iteration_bounds = array<i64: 1>, scalar_prefetch = 0 : i64, scratch_operands = 0 : i64, tpu.core_type = #tpu.core_type<tc>, window_params = [{transform_indices = @transform_0, window_bounds = array<i64: 1, 16, 32>}, {pipeline_mode = #tpu.pipeline_mode<synchronous>, transform_indices = @transform_1, window_bounds = array<i64: 32, 64>}, {pipeline_mode = #tpu.pipeline_mode<synchronous>, transform_indices = @transform_2, window_bounds = array<i64: 64, 128>}, {pipeline_mode = #tpu.pipeline_mode<synchronous>, transform_indices = @transform_3, window_bounds = array<i64: 128, 384>}, {pipeline_mode = #tpu.pipeline_mode<synchronous>, transform_indices = @transform_4, window_bounds = array<i64: 128, 128>}, {pipeline_mode = #tpu.pipeline_mode<synchronous>, transform_indices = @transform_5, window_bounds = array<i64: 128, 256>}, {pipeline_mode = #tpu.pipeline_mode<synchronous>, transform_indices = @transform_6, window_bounds = array<i64: 256, 128>}, {pipeline_mode = #tpu.pipeline_mode<synchronous>, transform_indices = @transform_7, window_bounds = array<i64: 128, 128>}, {pipeline_mode = #tpu.pipeline_mode<synchronous>, transform_indices = @transform_8, window_bounds = array<i64: 128, 1>}, {pipeline_mode = #tpu.pipeline_mode<synchronous>, transform_indices = @transform_9, window_bounds = array<i64: 128, 128>}, {pipeline_mode = #tpu.pipeline_mode<synchronous>, transform_indices = @transform_10, window_bounds = array<i64: 128, 128>}, {pipeline_mode = #tpu.pipeline_mode<synchronous>, transform_indices = @transform_11, window_bounds = array<i64: 1, 1920>}, {transform_indices = @transform_12, window_bounds = array<i64: 1, 2, 1>}]} {
    %c0 = arith.constant 0 : index
    %c0_0 = arith.constant 0 : index
    %c0_1 = arith.constant 0 : index
    %0 = vector.load %arg1[%c0, %c0_0, %c0_1] : memref<1x16x32xf32, #tpu.memory_space<vmem>>, vector<1x16x32xf32>
    %1 = vector.shape_cast %0 : vector<1x16x32xf32> to vector<16x32xf32>
    %2 = arith.truncf %1 : vector<16x32xf32> to vector<16x32xbf16>
    %c0_2 = arith.constant 0 : index
    %c0_3 = arith.constant 0 : index
    %3 = vector.load %arg2[%c0_2, %c0_3] : memref<32x64xbf16, #tpu.memory_space<vmem>>, vector<32x64xbf16>
    %cst = arith.constant dense<0.000000e+00> : vector<16x64xf32>
    %4 = tpu.matmul %2, %3, %cst {dimension_numbers = #tpu.dot_dimension_numbers<[1], [0], [0], [1], [0, 0, 1, 1], [], []>} : vector<16x32xbf16>, vector<32x64xbf16>, vector<16x64xf32> -> vector<16x64xf32>
    %c0_4 = arith.constant 0 : index
    %c0_5 = arith.constant 0 : index
    %5 = vector.load %arg12[%c0_4, %c0_5] : memref<1x1920xf32, #tpu.memory_space<vmem>>, vector<1x64xf32>
    %6 = vector.broadcast %5 : vector<1x64xf32> to vector<16x64xf32>
    %7 = arith.addf %4, %6 : vector<16x64xf32>
    %8 = math.tanh %7 : vector<16x64xf32>
    %9 = arith.truncf %8 : vector<16x64xf32> to vector<16x64xbf16>
    %c0_6 = arith.constant 0 : index
    %c0_7 = arith.constant 0 : index
    %10 = vector.load %arg3[%c0_6, %c0_7] : memref<64x128xbf16, #tpu.memory_space<vmem>>, vector<64x128xbf16>
    %cst_8 = arith.constant dense<0.000000e+00> : vector<16x128xf32>
    %11 = tpu.matmul %9, %10, %cst_8 {dimension_numbers = #tpu.dot_dimension_numbers<[1], [0], [0], [1], [0, 0, 1, 1], [], []>} : vector<16x64xbf16>, vector<64x128xbf16>, vector<16x128xf32> -> vector<16x128xf32>
    %c0_9 = arith.constant 0 : index
    %c128 = arith.constant 128 : index
    %12 = vector.load %arg12[%c0_9, %c128] : memref<1x1920xf32, #tpu.memory_space<vmem>>, vector<1x128xf32>
    %13 = vector.broadcast %12 : vector<1x128xf32> to vector<16x128xf32>
    %14 = arith.addf %11, %13 : vector<16x128xf32>
    %15 = arith.truncf %14 : vector<16x128xf32> to vector<16x128xbf16>
    %c0_10 = arith.constant 0 : index
    %c0_11 = arith.constant 0 : index
    %16 = vector.load %arg4[%c0_10, %c0_11] : memref<128x384xbf16, #tpu.memory_space<vmem>>, vector<128x384xbf16>
    %cst_12 = arith.constant dense<0.000000e+00> : vector<16x384xf32>
    %17 = tpu.matmul %15, %16, %cst_12 {dimension_numbers = #tpu.dot_dimension_numbers<[1], [0], [0], [1], [0, 0, 1, 1], [], []>} : vector<16x128xbf16>, vector<128x384xbf16>, vector<16x384xf32> -> vector<16x384xf32>
    %c0_13 = arith.constant 0 : index
    %c256 = arith.constant 256 : index
    %18 = vector.load %arg12[%c0_13, %c256] : memref<1x1920xf32, #tpu.memory_space<vmem>>, vector<1x384xf32>
    %19 = vector.broadcast %18 : vector<1x384xf32> to vector<16x384xf32>
    %20 = arith.addf %17, %19 : vector<16x384xf32>
    %21 = vector.extract_strided_slice %20 {offsets = [0, 0], sizes = [16, 128], strides = [1, 1]} : vector<16x384xf32> to vector<16x128xf32>
    %cst_14 = arith.constant 0.000000e+00 : f32
    %22 = vector.broadcast %cst_14 : f32 to vector<16x128xf32>
    %23 = arith.cmpf ogt, %21, %22 : vector<16x128xf32>
    %cst_15 = arith.constant 1.000000e+00 : f32
    %24 = vector.broadcast %cst_15 : f32 to vector<16x128xf32>
    %25 = arith.addf %21, %24 : vector<16x128xf32>
    %26 = math.exp %21 : vector<16x128xf32>
    %27 = arith.select %23, %25, %26 : vector<16x128xi1>, vector<16x128xf32>
    %28 = vector.extract_strided_slice %20 {offsets = [0, 128], sizes = [16, 128], strides = [1, 1]} : vector<16x384xf32> to vector<16x128xf32>
    %cst_16 = arith.constant 0.000000e+00 : f32
    %29 = vector.broadcast %cst_16 : f32 to vector<16x128xf32>
    %30 = arith.cmpf ogt, %28, %29 : vector<16x128xf32>
    %cst_17 = arith.constant 1.000000e+00 : f32
    %31 = vector.broadcast %cst_17 : f32 to vector<16x128xf32>
    %32 = arith.addf %28, %31 : vector<16x128xf32>
    %33 = math.exp %28 : vector<16x128xf32>
    %34 = arith.select %30, %32, %33 : vector<16x128xi1>, vector<16x128xf32>
    %35 = vector.extract_strided_slice %20 {offsets = [0, 256], sizes = [16, 128], strides = [1, 1]} : vector<16x384xf32> to vector<16x128xf32>
    %36 = vector.shape_cast %27 : vector<16x128xf32> to vector<2x8x128xf32>
    %37 = vector.shape_cast %34 : vector<16x128xf32> to vector<2x8x128xf32>
    %38 = vector.shape_cast %35 : vector<16x128xf32> to vector<2x8x128xf32>
    %39 = arith.truncf %37 : vector<2x8x128xf32> to vector<2x8x128xbf16>
    %40 = arith.truncf %38 : vector<2x8x128xf32> to vector<2x8x128xbf16>
    "tpu.trace_start"() <{level = 10 : i32, message = "bsd,bse->bde"}> : () -> ()
    %cst_18 = arith.constant dense<0.000000e+00> : vector<2x128x128xf32>
    %41 = tpu.matmul %39, %40, %cst_18 {dimension_numbers = #tpu.dot_dimension_numbers<[1], [1], [2], [2], [0, 0, 0, 2, 1, 2], [0], [0]>} : vector<2x8x128xbf16>, vector<2x8x128xbf16>, vector<2x128x128xf32> -> vector<2x128x128xf32>
    "tpu.trace_stop"() : () -> ()
    %c0_19 = arith.constant 0 : index
    %c0_20 = arith.constant 0 : index
    %42 = vector.load %arg10[%c0_19, %c0_20] : memref<128x128xf32, #tpu.memory_space<vmem>>, vector<128x128xf32>
    %43 = vector.shape_cast %42 : vector<128x128xf32> to vector<1x128x128xf32>
    %44 = vector.broadcast %43 : vector<1x128x128xf32> to vector<2x128x128xf32>
    %45 = arith.mulf %41, %44 : vector<2x128x128xf32>
    %46 = arith.truncf %45 : vector<2x128x128xf32> to vector<2x128x128xbf16>
    %47 = arith.truncf %36 : vector<2x8x128xf32> to vector<2x8x128xbf16>
    "tpu.trace_start"() <{level = 10 : i32, message = "bsd,bde->bse"}> : () -> ()
    %cst_21 = arith.constant dense<0.000000e+00> : vector<2x8x128xf32>
    %48 = tpu.matmul %47, %46, %cst_21 {dimension_numbers = #tpu.dot_dimension_numbers<[2], [1], [1], [2], [0, 0, 0, 1, 1, 2], [0], [0]>} : vector<2x8x128xbf16>, vector<2x128x128xbf16>, vector<2x8x128xf32> -> vector<2x8x128xf32>
    "tpu.trace_stop"() : () -> ()
    %49 = vector.shape_cast %48 : vector<2x8x128xf32> to vector<16x128xf32>
    %cst_22 = arith.constant dense<0.000000e+00> : vector<2x128xf32>
    %50 = vector.multi_reduction <add>, %37, %cst_22 [1] : vector<2x8x128xf32> to vector<2x128xf32>
    %51 = vector.shape_cast %50 : vector<2x128xf32> to vector<2x1x128xf32>
    %52 = vector.broadcast %51 : vector<2x1x128xf32> to vector<2x8x128xf32>
    %53 = arith.mulf %36, %52 : vector<2x8x128xf32>
    %54 = vector.shape_cast %53 : vector<2x8x128xf32> to vector<16x128xf32>
    %55 = arith.truncf %54 : vector<16x128xf32> to vector<16x128xbf16>
    %c0_23 = arith.constant 0 : index
    %c0_24 = arith.constant 0 : index
    %56 = vector.load %arg11[%c0_23, %c0_24] : memref<128x128xbf16, #tpu.memory_space<vmem>>, vector<128x128xbf16>
    %cst_25 = arith.constant dense<0.000000e+00> : vector<16x128xf32>
    %57 = tpu.matmul %55, %56, %cst_25 {dimension_numbers = #tpu.dot_dimension_numbers<[1], [0], [0], [1], [0, 0, 1, 1], [], []>} : vector<16x128xbf16>, vector<128x128xbf16>, vector<16x128xf32> -> vector<16x128xf32>
    %cst_26 = arith.constant 1.000000e-30 : f32
    %58 = vector.broadcast %cst_26 : f32 to vector<16x128xf32>
    %59 = arith.addf %57, %58 : vector<16x128xf32>
    %60 = tpu.reciprocal %59 {approx = true} : vector<16x128xf32> -> vector<16x128xf32>
    %61 = arith.mulf %59, %60 : vector<16x128xf32>
    %cst_27 = arith.constant 2.000000e+00 : f32
    %62 = vector.broadcast %cst_27 : f32 to vector<16x128xf32>
    %63 = arith.subf %62, %61 : vector<16x128xf32>
    %64 = arith.mulf %60, %63 : vector<16x128xf32>
    %65 = arith.mulf %49, %64 : vector<16x128xf32>
    %66 = arith.truncf %65 : vector<16x128xf32> to vector<16x128xbf16>
    %c0_28 = arith.constant 0 : index
    %c0_29 = arith.constant 0 : index
    %67 = vector.load %arg5[%c0_28, %c0_29] : memref<128x128xbf16, #tpu.memory_space<vmem>>, vector<128x128xbf16>
    %cst_30 = arith.constant dense<0.000000e+00> : vector<16x128xf32>
    %68 = tpu.matmul %66, %67, %cst_30 {dimension_numbers = #tpu.dot_dimension_numbers<[1], [0], [0], [1], [0, 0, 1, 1], [], []>} : vector<16x128xbf16>, vector<128x128xbf16>, vector<16x128xf32> -> vector<16x128xf32>
    %c0_31 = arith.constant 0 : index
    %c640 = arith.constant 640 : index
    %69 = vector.load %arg12[%c0_31, %c640] : memref<1x1920xf32, #tpu.memory_space<vmem>>, vector<1x128xf32>
    %70 = vector.broadcast %69 : vector<1x128xf32> to vector<16x128xf32>
    %71 = arith.addf %68, %70 : vector<16x128xf32>
    %72 = arith.addf %14, %71 : vector<16x128xf32>
    %c0_32 = arith.constant 0 : index
    %c768 = arith.constant 768 : index
    %73 = vector.load %arg12[%c0_32, %c768] : memref<1x1920xf32, #tpu.memory_space<vmem>>, vector<1x128xf32>
    %c0_33 = arith.constant 0 : index
    %c896 = arith.constant 896 : index
    %74 = vector.load %arg12[%c0_33, %c896] : memref<1x1920xf32, #tpu.memory_space<vmem>>, vector<1x128xf32>
    %cst_34 = arith.constant dense<0.000000e+00> : vector<16xf32>
    %75 = vector.multi_reduction <add>, %72, %cst_34 [1] : vector<16x128xf32> to vector<16xf32>
    %76 = vector.shape_cast %75 : vector<16xf32> to vector<16x1xf32>
    %cst_35 = arith.constant 1.280000e+02 : f32
    %77 = vector.broadcast %cst_35 : f32 to vector<16x1xf32>
    %78 = arith.divf %76, %77 : vector<16x1xf32>
    %79 = vector.broadcast %78 : vector<16x1xf32> to vector<16x128xf32>
    %80 = arith.subf %72, %79 : vector<16x128xf32>
    %81 = vector.broadcast %78 : vector<16x1xf32> to vector<16x128xf32>
    %82 = arith.subf %72, %81 : vector<16x128xf32>
    %83 = arith.mulf %80, %82 : vector<16x128xf32>
    %cst_36 = arith.constant dense<0.000000e+00> : vector<16xf32>
    %84 = vector.multi_reduction <add>, %83, %cst_36 [1] : vector<16x128xf32> to vector<16xf32>
    %85 = vector.shape_cast %84 : vector<16xf32> to vector<16x1xf32>
    %cst_37 = arith.constant 1.280000e+02 : f32
    %86 = vector.broadcast %cst_37 : f32 to vector<16x1xf32>
    %87 = arith.divf %85, %86 : vector<16x1xf32>
    %88 = vector.broadcast %78 : vector<16x1xf32> to vector<16x128xf32>
    %89 = arith.subf %72, %88 : vector<16x128xf32>
    %cst_38 = arith.constant 9.99999996E-13 : f32
    %90 = vector.broadcast %cst_38 : f32 to vector<16x1xf32>
    %91 = arith.addf %87, %90 : vector<16x1xf32>
    %92 = math.rsqrt %91 : vector<16x1xf32>
    %93 = vector.broadcast %92 : vector<16x1xf32> to vector<16x128xf32>
    %94 = arith.mulf %89, %93 : vector<16x128xf32>
    %95 = vector.broadcast %73 : vector<1x128xf32> to vector<16x128xf32>
    %96 = arith.mulf %94, %95 : vector<16x128xf32>
    %97 = vector.broadcast %74 : vector<1x128xf32> to vector<16x128xf32>
    %98 = arith.addf %96, %97 : vector<16x128xf32>
    %99 = arith.truncf %98 : vector<16x128xf32> to vector<16x128xbf16>
    %c0_39 = arith.constant 0 : index
    %c0_40 = arith.constant 0 : index
    %100 = vector.load %arg6[%c0_39, %c0_40] : memref<128x256xbf16, #tpu.memory_space<vmem>>, vector<128x256xbf16>
    %cst_41 = arith.constant dense<0.000000e+00> : vector<16x256xf32>
    %101 = tpu.matmul %99, %100, %cst_41 {dimension_numbers = #tpu.dot_dimension_numbers<[1], [0], [0], [1], [0, 0, 1, 1], [], []>} : vector<16x128xbf16>, vector<128x256xbf16>, vector<16x256xf32> -> vector<16x256xf32>
    %c0_42 = arith.constant 0 : index
    %c1024 = arith.constant 1024 : index
    %102 = vector.load %arg12[%c0_42, %c1024] : memref<1x1920xf32, #tpu.memory_space<vmem>>, vector<1x256xf32>
    %103 = vector.broadcast %102 : vector<1x256xf32> to vector<16x256xf32>
    %104 = arith.addf %101, %103 : vector<16x256xf32>
    %cst_43 = arith.constant 5.000000e-01 : f32
    %105 = vector.broadcast %cst_43 : f32 to vector<16x256xf32>
    %106 = arith.mulf %105, %104 : vector<16x256xf32>
    %cst_44 = arith.constant 4.471500e-02 : f32
    %107 = vector.broadcast %cst_44 : f32 to vector<16x256xf32>
    %108 = arith.mulf %107, %104 : vector<16x256xf32>
    %109 = arith.mulf %108, %104 : vector<16x256xf32>
    %110 = arith.mulf %109, %104 : vector<16x256xf32>
    %111 = arith.addf %104, %110 : vector<16x256xf32>
    %cst_45 = arith.constant 0.797884583 : f32
    %112 = vector.broadcast %cst_45 : f32 to vector<16x256xf32>
    %113 = arith.mulf %112, %111 : vector<16x256xf32>
    %114 = math.tanh %113 : vector<16x256xf32>
    %cst_46 = arith.constant 1.000000e+00 : f32
    %115 = vector.broadcast %cst_46 : f32 to vector<16x256xf32>
    %116 = arith.addf %115, %114 : vector<16x256xf32>
    %117 = arith.mulf %106, %116 : vector<16x256xf32>
    %118 = arith.truncf %117 : vector<16x256xf32> to vector<16x256xbf16>
    %c0_47 = arith.constant 0 : index
    %c0_48 = arith.constant 0 : index
    %119 = vector.load %arg7[%c0_47, %c0_48] : memref<256x128xbf16, #tpu.memory_space<vmem>>, vector<256x128xbf16>
    %cst_49 = arith.constant dense<0.000000e+00> : vector<16x128xf32>
    %120 = tpu.matmul %118, %119, %cst_49 {dimension_numbers = #tpu.dot_dimension_numbers<[1], [0], [0], [1], [0, 0, 1, 1], [], []>} : vector<16x256xbf16>, vector<256x128xbf16>, vector<16x128xf32> -> vector<16x128xf32>
    %c0_50 = arith.constant 0 : index
    %c1280 = arith.constant 1280 : index
    %121 = vector.load %arg12[%c0_50, %c1280] : memref<1x1920xf32, #tpu.memory_space<vmem>>, vector<1x128xf32>
    %122 = vector.broadcast %121 : vector<1x128xf32> to vector<16x128xf32>
    %123 = arith.addf %120, %122 : vector<16x128xf32>
    %124 = arith.addf %123, %98 : vector<16x128xf32>
    %c0_51 = arith.constant 0 : index
    %c1408 = arith.constant 1408 : index
    %125 = vector.load %arg12[%c0_51, %c1408] : memref<1x1920xf32, #tpu.memory_space<vmem>>, vector<1x128xf32>
    %c0_52 = arith.constant 0 : index
    %c1536 = arith.constant 1536 : index
    %126 = vector.load %arg12[%c0_52, %c1536] : memref<1x1920xf32, #tpu.memory_space<vmem>>, vector<1x128xf32>
    %cst_53 = arith.constant dense<0.000000e+00> : vector<16xf32>
    %127 = vector.multi_reduction <add>, %124, %cst_53 [1] : vector<16x128xf32> to vector<16xf32>
    %128 = vector.shape_cast %127 : vector<16xf32> to vector<16x1xf32>
    %cst_54 = arith.constant 1.280000e+02 : f32
    %129 = vector.broadcast %cst_54 : f32 to vector<16x1xf32>
    %130 = arith.divf %128, %129 : vector<16x1xf32>
    %131 = vector.broadcast %130 : vector<16x1xf32> to vector<16x128xf32>
    %132 = arith.subf %124, %131 : vector<16x128xf32>
    %133 = vector.broadcast %130 : vector<16x1xf32> to vector<16x128xf32>
    %134 = arith.subf %124, %133 : vector<16x128xf32>
    %135 = arith.mulf %132, %134 : vector<16x128xf32>
    %cst_55 = arith.constant dense<0.000000e+00> : vector<16xf32>
    %136 = vector.multi_reduction <add>, %135, %cst_55 [1] : vector<16x128xf32> to vector<16xf32>
    %137 = vector.shape_cast %136 : vector<16xf32> to vector<16x1xf32>
    %cst_56 = arith.constant 1.280000e+02 : f32
    %138 = vector.broadcast %cst_56 : f32 to vector<16x1xf32>
    %139 = arith.divf %137, %138 : vector<16x1xf32>
    %140 = vector.broadcast %130 : vector<16x1xf32> to vector<16x128xf32>
    %141 = arith.subf %124, %140 : vector<16x128xf32>
    %cst_57 = arith.constant 9.99999996E-13 : f32
    %142 = vector.broadcast %cst_57 : f32 to vector<16x1xf32>
    %143 = arith.addf %139, %142 : vector<16x1xf32>
    %144 = math.rsqrt %143 : vector<16x1xf32>
    %145 = vector.broadcast %144 : vector<16x1xf32> to vector<16x128xf32>
    %146 = arith.mulf %141, %145 : vector<16x128xf32>
    %147 = vector.broadcast %125 : vector<1x128xf32> to vector<16x128xf32>
    %148 = arith.mulf %146, %147 : vector<16x128xf32>
    %149 = vector.broadcast %126 : vector<1x128xf32> to vector<16x128xf32>
    %150 = arith.addf %148, %149 : vector<16x128xf32>
    %151 = arith.truncf %150 : vector<16x128xf32> to vector<16x128xbf16>
    %c0_58 = arith.constant 0 : index
    %c0_59 = arith.constant 0 : index
    %152 = vector.load %arg4[%c0_58, %c0_59] : memref<128x384xbf16, #tpu.memory_space<vmem>>, vector<128x384xbf16>
    %cst_60 = arith.constant dense<0.000000e+00> : vector<16x384xf32>
    %153 = tpu.matmul %151, %152, %cst_60 {dimension_numbers = #tpu.dot_dimension_numbers<[1], [0], [0], [1], [0, 0, 1, 1], [], []>} : vector<16x128xbf16>, vector<128x384xbf16>, vector<16x384xf32> -> vector<16x384xf32>
    %c0_61 = arith.constant 0 : index
    %c256_62 = arith.constant 256 : index
    %154 = vector.load %arg12[%c0_61, %c256_62] : memref<1x1920xf32, #tpu.memory_space<vmem>>, vector<1x384xf32>
    %155 = vector.broadcast %154 : vector<1x384xf32> to vector<16x384xf32>
    %156 = arith.addf %153, %155 : vector<16x384xf32>
    %157 = vector.extract_strided_slice %156 {offsets = [0, 0], sizes = [16, 128], strides = [1, 1]} : vector<16x384xf32> to vector<16x128xf32>
    %cst_63 = arith.constant 0.000000e+00 : f32
    %158 = vector.broadcast %cst_63 : f32 to vector<16x128xf32>
    %159 = arith.cmpf ogt, %157, %158 : vector<16x128xf32>
    %cst_64 = arith.constant 1.000000e+00 : f32
    %160 = vector.broadcast %cst_64 : f32 to vector<16x128xf32>
    %161 = arith.addf %157, %160 : vector<16x128xf32>
    %162 = math.exp %157 : vector<16x128xf32>
    %163 = arith.select %159, %161, %162 : vector<16x128xi1>, vector<16x128xf32>
    %164 = vector.extract_strided_slice %156 {offsets = [0, 128], sizes = [16, 128], strides = [1, 1]} : vector<16x384xf32> to vector<16x128xf32>
    %cst_65 = arith.constant 0.000000e+00 : f32
    %165 = vector.broadcast %cst_65 : f32 to vector<16x128xf32>
    %166 = arith.cmpf ogt, %164, %165 : vector<16x128xf32>
    %cst_66 = arith.constant 1.000000e+00 : f32
    %167 = vector.broadcast %cst_66 : f32 to vector<16x128xf32>
    %168 = arith.addf %164, %167 : vector<16x128xf32>
    %169 = math.exp %164 : vector<16x128xf32>
    %170 = arith.select %166, %168, %169 : vector<16x128xi1>, vector<16x128xf32>
    %171 = vector.extract_strided_slice %156 {offsets = [0, 256], sizes = [16, 128], strides = [1, 1]} : vector<16x384xf32> to vector<16x128xf32>
    %172 = vector.shape_cast %163 : vector<16x128xf32> to vector<2x8x128xf32>
    %173 = vector.shape_cast %170 : vector<16x128xf32> to vector<2x8x128xf32>
    %174 = vector.shape_cast %171 : vector<16x128xf32> to vector<2x8x128xf32>
    %175 = arith.truncf %173 : vector<2x8x128xf32> to vector<2x8x128xbf16>
    %176 = arith.truncf %174 : vector<2x8x128xf32> to vector<2x8x128xbf16>
    "tpu.trace_start"() <{level = 10 : i32, message = "bsd,bse->bde"}> : () -> ()
    %cst_67 = arith.constant dense<0.000000e+00> : vector<2x128x128xf32>
    %177 = tpu.matmul %175, %176, %cst_67 {dimension_numbers = #tpu.dot_dimension_numbers<[1], [1], [2], [2], [0, 0, 0, 2, 1, 2], [0], [0]>} : vector<2x8x128xbf16>, vector<2x8x128xbf16>, vector<2x128x128xf32> -> vector<2x128x128xf32>
    "tpu.trace_stop"() : () -> ()
    %c0_68 = arith.constant 0 : index
    %c0_69 = arith.constant 0 : index
    %178 = vector.load %arg10[%c0_68, %c0_69] : memref<128x128xf32, #tpu.memory_space<vmem>>, vector<128x128xf32>
    %179 = vector.shape_cast %178 : vector<128x128xf32> to vector<1x128x128xf32>
    %180 = vector.broadcast %179 : vector<1x128x128xf32> to vector<2x128x128xf32>
    %181 = arith.mulf %177, %180 : vector<2x128x128xf32>
    %182 = arith.truncf %181 : vector<2x128x128xf32> to vector<2x128x128xbf16>
    %183 = arith.truncf %172 : vector<2x8x128xf32> to vector<2x8x128xbf16>
    "tpu.trace_start"() <{level = 10 : i32, message = "bsd,bde->bse"}> : () -> ()
    %cst_70 = arith.constant dense<0.000000e+00> : vector<2x8x128xf32>
    %184 = tpu.matmul %183, %182, %cst_70 {dimension_numbers = #tpu.dot_dimension_numbers<[2], [1], [1], [2], [0, 0, 0, 1, 1, 2], [0], [0]>} : vector<2x8x128xbf16>, vector<2x128x128xbf16>, vector<2x8x128xf32> -> vector<2x8x128xf32>
    "tpu.trace_stop"() : () -> ()
    %185 = vector.shape_cast %184 : vector<2x8x128xf32> to vector<16x128xf32>
    %cst_71 = arith.constant dense<0.000000e+00> : vector<2x128xf32>
    %186 = vector.multi_reduction <add>, %173, %cst_71 [1] : vector<2x8x128xf32> to vector<2x128xf32>
    %187 = vector.shape_cast %186 : vector<2x128xf32> to vector<2x1x128xf32>
    %188 = vector.broadcast %187 : vector<2x1x128xf32> to vector<2x8x128xf32>
    %189 = arith.mulf %172, %188 : vector<2x8x128xf32>
    %190 = vector.shape_cast %189 : vector<2x8x128xf32> to vector<16x128xf32>
    %191 = arith.truncf %190 : vector<16x128xf32> to vector<16x128xbf16>
    %c0_72 = arith.constant 0 : index
    %c0_73 = arith.constant 0 : index
    %192 = vector.load %arg11[%c0_72, %c0_73] : memref<128x128xbf16, #tpu.memory_space<vmem>>, vector<128x128xbf16>
    %cst_74 = arith.constant dense<0.000000e+00> : vector<16x128xf32>
    %193 = tpu.matmul %191, %192, %cst_74 {dimension_numbers = #tpu.dot_dimension_numbers<[1], [0], [0], [1], [0, 0, 1, 1], [], []>} : vector<16x128xbf16>, vector<128x128xbf16>, vector<16x128xf32> -> vector<16x128xf32>
    %cst_75 = arith.constant 1.000000e-30 : f32
    %194 = vector.broadcast %cst_75 : f32 to vector<16x128xf32>
    %195 = arith.addf %193, %194 : vector<16x128xf32>
    %196 = tpu.reciprocal %195 {approx = true} : vector<16x128xf32> -> vector<16x128xf32>
    %197 = arith.mulf %195, %196 : vector<16x128xf32>
    %cst_76 = arith.constant 2.000000e+00 : f32
    %198 = vector.broadcast %cst_76 : f32 to vector<16x128xf32>
    %199 = arith.subf %198, %197 : vector<16x128xf32>
    %200 = arith.mulf %196, %199 : vector<16x128xf32>
    %201 = arith.mulf %185, %200 : vector<16x128xf32>
    %202 = arith.truncf %201 : vector<16x128xf32> to vector<16x128xbf16>
    %c0_77 = arith.constant 0 : index
    %c0_78 = arith.constant 0 : index
    %203 = vector.load %arg5[%c0_77, %c0_78] : memref<128x128xbf16, #tpu.memory_space<vmem>>, vector<128x128xbf16>
    %cst_79 = arith.constant dense<0.000000e+00> : vector<16x128xf32>
    %204 = tpu.matmul %202, %203, %cst_79 {dimension_numbers = #tpu.dot_dimension_numbers<[1], [0], [0], [1], [0, 0, 1, 1], [], []>} : vector<16x128xbf16>, vector<128x128xbf16>, vector<16x128xf32> -> vector<16x128xf32>
    %c0_80 = arith.constant 0 : index
    %c640_81 = arith.constant 640 : index
    %205 = vector.load %arg12[%c0_80, %c640_81] : memref<1x1920xf32, #tpu.memory_space<vmem>>, vector<1x128xf32>
    %206 = vector.broadcast %205 : vector<1x128xf32> to vector<16x128xf32>
    %207 = arith.addf %204, %206 : vector<16x128xf32>
    %208 = arith.addf %150, %207 : vector<16x128xf32>
    %c0_82 = arith.constant 0 : index
    %c768_83 = arith.constant 768 : index
    %209 = vector.load %arg12[%c0_82, %c768_83] : memref<1x1920xf32, #tpu.memory_space<vmem>>, vector<1x128xf32>
    %c0_84 = arith.constant 0 : index
    %c896_85 = arith.constant 896 : index
    %210 = vector.load %arg12[%c0_84, %c896_85] : memref<1x1920xf32, #tpu.memory_space<vmem>>, vector<1x128xf32>
    %cst_86 = arith.constant dense<0.000000e+00> : vector<16xf32>
    %211 = vector.multi_reduction <add>, %208, %cst_86 [1] : vector<16x128xf32> to vector<16xf32>
    %212 = vector.shape_cast %211 : vector<16xf32> to vector<16x1xf32>
    %cst_87 = arith.constant 1.280000e+02 : f32
    %213 = vector.broadcast %cst_87 : f32 to vector<16x1xf32>
    %214 = arith.divf %212, %213 : vector<16x1xf32>
    %215 = vector.broadcast %214 : vector<16x1xf32> to vector<16x128xf32>
    %216 = arith.subf %208, %215 : vector<16x128xf32>
    %217 = vector.broadcast %214 : vector<16x1xf32> to vector<16x128xf32>
    %218 = arith.subf %208, %217 : vector<16x128xf32>
    %219 = arith.mulf %216, %218 : vector<16x128xf32>
    %cst_88 = arith.constant dense<0.000000e+00> : vector<16xf32>
    %220 = vector.multi_reduction <add>, %219, %cst_88 [1] : vector<16x128xf32> to vector<16xf32>
    %221 = vector.shape_cast %220 : vector<16xf32> to vector<16x1xf32>
    %cst_89 = arith.constant 1.280000e+02 : f32
    %222 = vector.broadcast %cst_89 : f32 to vector<16x1xf32>
    %223 = arith.divf %221, %222 : vector<16x1xf32>
    %224 = vector.broadcast %214 : vector<16x1xf32> to vector<16x128xf32>
    %225 = arith.subf %208, %224 : vector<16x128xf32>
    %cst_90 = arith.constant 9.99999996E-13 : f32
    %226 = vector.broadcast %cst_90 : f32 to vector<16x1xf32>
    %227 = arith.addf %223, %226 : vector<16x1xf32>
    %228 = math.rsqrt %227 : vector<16x1xf32>
    %229 = vector.broadcast %228 : vector<16x1xf32> to vector<16x128xf32>
    %230 = arith.mulf %225, %229 : vector<16x128xf32>
    %231 = vector.broadcast %209 : vector<1x128xf32> to vector<16x128xf32>
    %232 = arith.mulf %230, %231 : vector<16x128xf32>
    %233 = vector.broadcast %210 : vector<1x128xf32> to vector<16x128xf32>
    %234 = arith.addf %232, %233 : vector<16x128xf32>
    %235 = arith.truncf %234 : vector<16x128xf32> to vector<16x128xbf16>
    %c0_91 = arith.constant 0 : index
    %c0_92 = arith.constant 0 : index
    %236 = vector.load %arg6[%c0_91, %c0_92] : memref<128x256xbf16, #tpu.memory_space<vmem>>, vector<128x256xbf16>
    %cst_93 = arith.constant dense<0.000000e+00> : vector<16x256xf32>
    %237 = tpu.matmul %235, %236, %cst_93 {dimension_numbers = #tpu.dot_dimension_numbers<[1], [0], [0], [1], [0, 0, 1, 1], [], []>} : vector<16x128xbf16>, vector<128x256xbf16>, vector<16x256xf32> -> vector<16x256xf32>
    %c0_94 = arith.constant 0 : index
    %c1024_95 = arith.constant 1024 : index
    %238 = vector.load %arg12[%c0_94, %c1024_95] : memref<1x1920xf32, #tpu.memory_space<vmem>>, vector<1x256xf32>
    %239 = vector.broadcast %238 : vector<1x256xf32> to vector<16x256xf32>
    %240 = arith.addf %237, %239 : vector<16x256xf32>
    %cst_96 = arith.constant 5.000000e-01 : f32
    %241 = vector.broadcast %cst_96 : f32 to vector<16x256xf32>
    %242 = arith.mulf %241, %240 : vector<16x256xf32>
    %cst_97 = arith.constant 4.471500e-02 : f32
    %243 = vector.broadcast %cst_97 : f32 to vector<16x256xf32>
    %244 = arith.mulf %243, %240 : vector<16x256xf32>
    %245 = arith.mulf %244, %240 : vector<16x256xf32>
    %246 = arith.mulf %245, %240 : vector<16x256xf32>
    %247 = arith.addf %240, %246 : vector<16x256xf32>
    %cst_98 = arith.constant 0.797884583 : f32
    %248 = vector.broadcast %cst_98 : f32 to vector<16x256xf32>
    %249 = arith.mulf %248, %247 : vector<16x256xf32>
    %250 = math.tanh %249 : vector<16x256xf32>
    %cst_99 = arith.constant 1.000000e+00 : f32
    %251 = vector.broadcast %cst_99 : f32 to vector<16x256xf32>
    %252 = arith.addf %251, %250 : vector<16x256xf32>
    %253 = arith.mulf %242, %252 : vector<16x256xf32>
    %254 = arith.truncf %253 : vector<16x256xf32> to vector<16x256xbf16>
    %c0_100 = arith.constant 0 : index
    %c0_101 = arith.constant 0 : index
    %255 = vector.load %arg7[%c0_100, %c0_101] : memref<256x128xbf16, #tpu.memory_space<vmem>>, vector<256x128xbf16>
    %cst_102 = arith.constant dense<0.000000e+00> : vector<16x128xf32>
    %256 = tpu.matmul %254, %255, %cst_102 {dimension_numbers = #tpu.dot_dimension_numbers<[1], [0], [0], [1], [0, 0, 1, 1], [], []>} : vector<16x256xbf16>, vector<256x128xbf16>, vector<16x128xf32> -> vector<16x128xf32>
    %c0_103 = arith.constant 0 : index
    %c1280_104 = arith.constant 1280 : index
    %257 = vector.load %arg12[%c0_103, %c1280_104] : memref<1x1920xf32, #tpu.memory_space<vmem>>, vector<1x128xf32>
    %258 = vector.broadcast %257 : vector<1x128xf32> to vector<16x128xf32>
    %259 = arith.addf %256, %258 : vector<16x128xf32>
    %260 = arith.addf %259, %234 : vector<16x128xf32>
    %c0_105 = arith.constant 0 : index
    %c1408_106 = arith.constant 1408 : index
    %261 = vector.load %arg12[%c0_105, %c1408_106] : memref<1x1920xf32, #tpu.memory_space<vmem>>, vector<1x128xf32>
    %c0_107 = arith.constant 0 : index
    %c1536_108 = arith.constant 1536 : index
    %262 = vector.load %arg12[%c0_107, %c1536_108] : memref<1x1920xf32, #tpu.memory_space<vmem>>, vector<1x128xf32>
    %cst_109 = arith.constant dense<0.000000e+00> : vector<16xf32>
    %263 = vector.multi_reduction <add>, %260, %cst_109 [1] : vector<16x128xf32> to vector<16xf32>
    %264 = vector.shape_cast %263 : vector<16xf32> to vector<16x1xf32>
    %cst_110 = arith.constant 1.280000e+02 : f32
    %265 = vector.broadcast %cst_110 : f32 to vector<16x1xf32>
    %266 = arith.divf %264, %265 : vector<16x1xf32>
    %267 = vector.broadcast %266 : vector<16x1xf32> to vector<16x128xf32>
    %268 = arith.subf %260, %267 : vector<16x128xf32>
    %269 = vector.broadcast %266 : vector<16x1xf32> to vector<16x128xf32>
    %270 = arith.subf %260, %269 : vector<16x128xf32>
    %271 = arith.mulf %268, %270 : vector<16x128xf32>
    %cst_111 = arith.constant dense<0.000000e+00> : vector<16xf32>
    %272 = vector.multi_reduction <add>, %271, %cst_111 [1] : vector<16x128xf32> to vector<16xf32>
    %273 = vector.shape_cast %272 : vector<16xf32> to vector<16x1xf32>
    %cst_112 = arith.constant 1.280000e+02 : f32
    %274 = vector.broadcast %cst_112 : f32 to vector<16x1xf32>
    %275 = arith.divf %273, %274 : vector<16x1xf32>
    %276 = vector.broadcast %266 : vector<16x1xf32> to vector<16x128xf32>
    %277 = arith.subf %260, %276 : vector<16x128xf32>
    %cst_113 = arith.constant 9.99999996E-13 : f32
    %278 = vector.broadcast %cst_113 : f32 to vector<16x1xf32>
    %279 = arith.addf %275, %278 : vector<16x1xf32>
    %280 = math.rsqrt %279 : vector<16x1xf32>
    %281 = vector.broadcast %280 : vector<16x1xf32> to vector<16x128xf32>
    %282 = arith.mulf %277, %281 : vector<16x128xf32>
    %283 = vector.broadcast %261 : vector<1x128xf32> to vector<16x128xf32>
    %284 = arith.mulf %282, %283 : vector<16x128xf32>
    %285 = vector.broadcast %262 : vector<1x128xf32> to vector<16x128xf32>
    %286 = arith.addf %284, %285 : vector<16x128xf32>
    %287 = vector.shape_cast %286 : vector<16x128xf32> to vector<2x8x128xf32>
    %288 = vector.extract_strided_slice %287 {offsets = [0, 0, 0], sizes = [2, 1, 128], strides = [1, 1, 1]} : vector<2x8x128xf32> to vector<2x1x128xf32>
    %289 = vector.shape_cast %288 : vector<2x1x128xf32> to vector<2x128xf32>
    %290 = arith.truncf %289 : vector<2x128xf32> to vector<2x128xbf16>
    %c0_114 = arith.constant 0 : index
    %c0_115 = arith.constant 0 : index
    %291 = vector.load %arg8[%c0_114, %c0_115] : memref<128x128xbf16, #tpu.memory_space<vmem>>, vector<128x128xbf16>
    %cst_116 = arith.constant dense<0.000000e+00> : vector<2x128xf32>
    %292 = tpu.matmul %290, %291, %cst_116 {dimension_numbers = #tpu.dot_dimension_numbers<[1], [0], [0], [1], [0, 0, 1, 1], [], []>} : vector<2x128xbf16>, vector<128x128xbf16>, vector<2x128xf32> -> vector<2x128xf32>
    %c0_117 = arith.constant 0 : index
    %c1664 = arith.constant 1664 : index
    %293 = vector.load %arg12[%c0_117, %c1664] : memref<1x1920xf32, #tpu.memory_space<vmem>>, vector<1x128xf32>
    %294 = vector.broadcast %293 : vector<1x128xf32> to vector<2x128xf32>
    %295 = arith.addf %292, %294 : vector<2x128xf32>
    %296 = math.tanh %295 : vector<2x128xf32>
    %297 = arith.truncf %296 : vector<2x128xf32> to vector<2x128xbf16>
    %c0_118 = arith.constant 0 : index
    %c0_119 = arith.constant 0 : index
    %298 = vector.load %arg9[%c0_118, %c0_119] : memref<128x1xbf16, #tpu.memory_space<vmem>>, vector<128x1xbf16>
    %cst_120 = arith.constant dense<0.000000e+00> : vector<2x1xf32>
    %299 = tpu.matmul %297, %298, %cst_120 {dimension_numbers = #tpu.dot_dimension_numbers<[1], [0], [0], [1], [0, 0, 1, 1], [], []>} : vector<2x128xbf16>, vector<128x1xbf16>, vector<2x1xf32> -> vector<2x1xf32>
    %c0_121 = arith.constant 0 : index
    %c1792 = arith.constant 1792 : index
    %300 = vector.load %arg12[%c0_121, %c1792] : memref<1x1920xf32, #tpu.memory_space<vmem>>, vector<1x1xf32>
    %301 = vector.broadcast %300 : vector<1x1xf32> to vector<2x1xf32>
    %302 = arith.addf %299, %301 : vector<2x1xf32>
    %c0_122 = arith.constant 0 : index
    %c0_123 = arith.constant 0 : index
    %c0_124 = arith.constant 0 : index
    %303 = vector.load %arg13[%c0_122, %c0_123, %c0_124] : memref<1x2x1xf32, #tpu.memory_space<vmem>>, vector<1x2x1xf32>
    %304 = vector.shape_cast %303 : vector<1x2x1xf32> to vector<2x1xf32>
    %305 = vector.shape_cast %302 : vector<2x1xf32> to vector<1x2x1xf32>
    tpu.vector_store %arg13[%c0_122, %c0_123, %c0_124], %305 {strides = array<i32>} : memref<1x2x1xf32, #tpu.memory_space<vmem>>, vector<1x2x1xf32>,
    return
  }
  func.func @transform_0(%arg0: i32) -> (i32, i32, i32) {
    %c0_i32 = arith.constant 0 : i32
    %c0_i32_0 = arith.constant 0 : i32
    %c0_i32_1 = arith.constant 0 : i32
    return %arg0, %c0_i32, %c0_i32_0 : i32, i32, i32
  }
  func.func @transform_1(%arg0: i32) -> (i32, i32) {
    %c0_i32 = arith.constant 0 : i32
    %c0_i32_0 = arith.constant 0 : i32
    %c0_i32_1 = arith.constant 0 : i32
    return %c0_i32, %c0_i32_0 : i32, i32
  }
  func.func @transform_2(%arg0: i32) -> (i32, i32) {
    %c0_i32 = arith.constant 0 : i32
    %c0_i32_0 = arith.constant 0 : i32
    %c0_i32_1 = arith.constant 0 : i32
    return %c0_i32, %c0_i32_0 : i32, i32
  }
  func.func @transform_3(%arg0: i32) -> (i32, i32) {
    %c0_i32 = arith.constant 0 : i32
    %c0_i32_0 = arith.constant 0 : i32
    %c0_i32_1 = arith.constant 0 : i32
    return %c0_i32, %c0_i32_0 : i32, i32
  }
  func.func @transform_4(%arg0: i32) -> (i32, i32) {
    %c0_i32 = arith.constant 0 : i32
    %c0_i32_0 = arith.constant 0 : i32
    %c0_i32_1 = arith.constant 0 : i32
    return %c0_i32, %c0_i32_0 : i32, i32
  }
  func.func @transform_5(%arg0: i32) -> (i32, i32) {
    %c0_i32 = arith.constant 0 : i32
    %c0_i32_0 = arith.constant 0 : i32
    %c0_i32_1 = arith.constant 0 : i32
    return %c0_i32, %c0_i32_0 : i32, i32
  }
  func.func @transform_6(%arg0: i32) -> (i32, i32) {
    %c0_i32 = arith.constant 0 : i32
    %c0_i32_0 = arith.constant 0 : i32
    %c0_i32_1 = arith.constant 0 : i32
    return %c0_i32, %c0_i32_0 : i32, i32
  }
  func.func @transform_7(%arg0: i32) -> (i32, i32) {
    %c0_i32 = arith.constant 0 : i32
    %c0_i32_0 = arith.constant 0 : i32
    %c0_i32_1 = arith.constant 0 : i32
    return %c0_i32, %c0_i32_0 : i32, i32
  }
  func.func @transform_8(%arg0: i32) -> (i32, i32) {
    %c0_i32 = arith.constant 0 : i32
    %c0_i32_0 = arith.constant 0 : i32
    %c0_i32_1 = arith.constant 0 : i32
    return %c0_i32, %c0_i32_0 : i32, i32
  }
  func.func @transform_9(%arg0: i32) -> (i32, i32) {
    %c0_i32 = arith.constant 0 : i32
    %c0_i32_0 = arith.constant 0 : i32
    %c0_i32_1 = arith.constant 0 : i32
    return %c0_i32, %c0_i32_0 : i32, i32
  }
  func.func @transform_10(%arg0: i32) -> (i32, i32) {
    %c0_i32 = arith.constant 0 : i32
    %c0_i32_0 = arith.constant 0 : i32
    %c0_i32_1 = arith.constant 0 : i32
    return %c0_i32, %c0_i32_0 : i32, i32
  }
  func.func @transform_11(%arg0: i32) -> (i32, i32) {
    %c0_i32 = arith.constant 0 : i32
    %c0_i32_0 = arith.constant 0 : i32
    %c0_i32_1 = arith.constant 0 : i32
    return %c0_i32, %c0_i32_0 : i32, i32
  }
  func.func @transform_12(%arg0: i32) -> (i32, i32, i32) {
    %c0_i32 = arith.constant 0 : i32
    %c0_i32_0 = arith.constant 0 : i32
    %c0_i32_1 = arith.constant 0 : i32
    return %arg0, %c0_i32, %c0_i32_0 : i32, i32, i32
  }
}

</mosaic_0001>

<bundles_post_ra>
// kernel: oskar_forward.1
= control target key start
LH: loop header
LB: loop body
LE: loop exit
PB: predicated region body
PF: predicated region fallthrough
CT: control target
= control target key end

     0   :  { %v4265_v0 = vmov 0.0   ;;  %vm4266_vm0 = vmmov 0   ;;  %vm68_vm1 = vcmask 261120   ;;  %vm155_vm2 = vcmask 523264   ;;  %s5325_s1 = inlined_call_operand.vmem [shape: bf16[32,64], index: 1, kind: input, shape index: {}]   ;;  %s5326_s0 = inlined_call_operand.vmem [shape: f32[1,16,32], index: 0, kind: input, shape index: {}]   ;;  %s5327_s2 = inlined_call_operand.vmem [shape: bf16[64,128], index: 2, kind: input, shape index: {}]   ;;  %s5328_s3 = inlined_call_operand.vmem [shape: bf16[128,384], index: 3, kind: input, shape index: {}]   ;;  %s5329_s11 = inlined_call_operand.vmem [shape: f32[1,1920], index: 11, kind: input, shape index: {}]   ;;  %s5330_s10 = inlined_call_operand.vmem [shape: bf16[128,128], index: 10, kind: input, shape index: {}]   ;;  %s5331_s9 = inlined_call_operand.vmem [shape: f32[128,128], index: 9, kind: input, shape index: {}]   ;;  %s5332_s4 = inlined_call_operand.vmem [shape: bf16[128,128], index: 4, kind: input, shape index: {}]   ;;  %s5333_s5 = inlined_call_operand.vmem [shape: bf16[128,256], index: 5, kind: input, shape index: {}]   ;;  %s5334_s6 = inlined_call_operand.vmem [shape: bf16[256,128], index: 6, kind: input, shape index: {}]   ;;  %s5335_s7 = inlined_call_operand.vmem [shape: bf16[128,128], index: 7, kind: input, shape index: {}]   ;;  %s5336_s8 = inlined_call_operand.vmem [shape: bf16[128,1], index: 8, kind: input, shape index: {}]   ;;  %s5337_s12 = inlined_call_operand.vmem [shape: f32[1,2,1], index: 12, kind: output, shape index: {}]  }
   0x1   :  { %3666 = vmatprep.subr.bf16.mxu0 %v4265_v0  ;;  %v4005_v1 = vld [vmem:[%s5325_s1] sm:$0xff]   ;;  %3670 = vmatprep.mubr.msk.bf16.mxu0 %vm4266_vm0, %v4265_v0  ;;  %v4006_v2 = vld [vmem:[%s5325_s1 + $0x8] sm:$0xff]   ;;  %v4009_v8 = vld [vmem:[%s5327_s2 + $0x10] sm:$0xff]   ;;  %v4267_v44 = vmov 0   ;;  %v235_v53 = vlaneseq  ;;  %vm527_vm3 = vcmask 1043456   ;;  %vm502_vm8 = vcmask 64512  }
   0x2   :  { %3674 = vmatprep.subr.bf16.mxu1 %v4265_v0  ;;  %3682 = vmatprep.mubr.msk.bf16.mxu1 %vm4266_vm0, %v4265_v0  ;;  %v42_v3 = vld [vmem:[%s5326_s0] sm:$0xff]  ;;  %v43_v4 = vld [vmem:[%s5326_s0 + $0x8] sm:$0xff]  ;;  %v4010_v9 = vld [vmem:[%s5327_s2 + $0x18] sm:$0xff]   ;;  %vm3043_vm13 = vcmask 1041409   ;;  %vm3248_vm14 = vcmask 1024  }
   0x3   :  { %3667 = vmatpush3.bf16.msra.mxu0 %v4005_v1  ;;  %v44_v5 = vpack.c.bf16 %v43_v4, %v42_v3  ;;  %v4007_v6 = vld [vmem:[%s5327_s2] sm:$0xff]   ;;  %v4008_v7 = vld [vmem:[%s5327_s2 + $0x8] sm:$0xff]   ;;  %v4019_v15 = vld [vmem:[%s5328_s3 + $0x30] ss:$12 sps:$4 sm:$0xff]   ;;  %v4462_v54 = vshrl.u32 %v235_v53, 7 }
   0x4   :  { %3668 = vmatprep.subr.bf16.mxu0 %v4265_v0  ;;  %3675 = vmatpush3.bf16.msra.mxu1 %v4007_v6  ;;  %v4011_v10 = vld [vmem:[%s5328_s3] ss:$12 sps:$4 sm:$0xff]   ;;  %v4013_v11 = vld [vmem:[%s5328_s3 + $0x4] ss:$12 sps:$4 sm:$0xff]   ;;  %v4017_v12 = vld [vmem:[%s5328_s3 + $0x1c] ss:$12 sps:$4 sm:$0xff]  }
   0x5   :  { %3676 = vmatprep.subr.bf16.mxu1 %v4265_v0  ;;  %v4015_v13 = vld [vmem:[%s5328_s3 + $0x18] ss:$12 sps:$4 sm:$0xff]   ;;  %v4021_v14 = vld [vmem:[%s5328_s3 + $0x34] ss:$12 sps:$4 sm:$0xff]   ;;  %v4033_v20 = vld [vmem:[%s5328_s3 + $0x7c] ss:$12 sps:$4 sm:$0xff]  }
   0x6   :  { %v4025_v16 = vld [vmem:[%s5328_s3 + $0x4c] ss:$12 sps:$4 sm:$0xff]   ;;  %v4023_v17 = vld [vmem:[%s5328_s3 + $0x48] ss:$12 sps:$4 sm:$0xff]   ;;  %v4029_v18 = vld [vmem:[%s5328_s3 + $0x64] ss:$12 sps:$4 sm:$0xff]  }
   0x7   :  { %3669 = vmatpush3.bf16.msra.mxu0 %v4006_v2  ;;  %v4027_v19 = vld [vmem:[%s5328_s3 + $0x60] ss:$12 sps:$4 sm:$0xff]   ;;  %v4031_v21 = vld [vmem:[%s5328_s3 + $0x78] ss:$12 sps:$4 sm:$0xff]   ;;  %v4035_v23 = vld [vmem:[%s5328_s3 + $0x90] ss:$12 sps:$4 sm:$0xff]  }
   0x8   :  { %3677 = vmatpush3.bf16.msra.mxu1 %v4008_v7  ;;  %378 = vmatprep.subr.bf16.mxu0 %v4013_v11  ;;  %v4037_v22 = vld [vmem:[%s5328_s3 + $0x94] ss:$12 sps:$4 sm:$0xff]   ;;  %v4022_v36 = vld [vmem:[%s5328_s3 + $0x38] ss:$12 sps:$4 sm:$0xff]   ;;  %v4026_v37 = vld [vmem:[%s5328_s3 + $0x50] ss:$12 sps:$4 sm:$0xff]  }
   0x9   :  { %3678 = vmatprep.subr.bf16.mxu1 %v4265_v0  ;;  %v3254_v24 = vld [vmem:[%s5329_s11] ss:$0 sm:$0xff]  ;;  %v4014_v33 = vld [vmem:[%s5328_s3 + $0x8] ss:$12 sps:$4 sm:$0xff]   ;;  %v4038_v40 = vld [vmem:[%s5328_s3 + $0x98] ss:$12 sps:$4 sm:$0xff]  }
   0xa   :  { %3671 = vmatmul.mubr.msk.bf16.vlgmr.msra.gmra.mrb[0].mxu0 %vm68_vm1, %v44_v5  ;;  %v4018_v35 = vld [vmem:[%s5328_s3 + $0x20] ss:$12 sps:$4 sm:$0xff]   ;;  %v4030_v38 = vld [vmem:[%s5328_s3 + $0x68] ss:$12 sps:$4 sm:$0xff]   ;;  %v4042_v43 = vld [vmem:[%s5328_s3 + $0xb0] ss:$12 sps:$4 sm:$0xff]  }
   0xb   :  { %379 = vmatpush1.bf16.msra.mxu0 %v4011_v10  ;;  %v4034_v39 = vld [vmem:[%s5328_s3 + $0x80] ss:$12 sps:$4 sm:$0xff]   ;;  %v4039_v42 = vld [vmem:[%s5328_s3 + $0xa8] ss:$12 sps:$4 sm:$0xff]   ;;  %410 = vmatprep.mubr.bf16.mxu0 %v4267_v44  ;;  %v245_v55 = vsub.s32 2, %v4462_v54  ;;  %v4469_v57 = vsub.s32 1, %v4462_v54 }
   0xc   :  { %3679 = vmatpush3.bf16.msra.mxu1 %v4009_v8  ;;  %380 = vmatprep.subr.bf16.mxu0 %v4017_v12  ;;  %v4041_v41 = vld [vmem:[%s5328_s3 + $0xac] ss:$12 sps:$4 sm:$0xff]   ;;  %v3258_v45 = vld [vmem:[%s5329_s11 + $0x1] ss:$0 sm:$0xff]  ;;  %v233_v56 = vld [vmem:[%s5329_s11 + $0x2] sm:$0x7] }
   0xd   :  { %3680 = vmatprep.subr.bf16.mxu1 %v4265_v0  ;;  %v246_v58 = vrot.slane %v233_v56, %v245_v55  ;;  %v242_v59 = vrot.slane %v233_v56, %v4469_v57  ;;  %v4475_v60 = vsub.s32 0, %v4462_v54 }
   0xf   :  { %381 = vmatpush1.bf16.msra.mxu0 %v4015_v13 }
  0x10   :  { %3681 = vmatpush3.bf16.msra.mxu1 %v4010_v9  ;;  %382 = vmatprep.subr.bf16.mxu0 %v4021_v14  ;;  %v238_v9 = vrot.slane %v233_v56, %v4475_v60 }
  0x11   :  { %3686 = vmatprep.subr.bf16.mxu1 %v4265_v0 }
  0x13   :  { %383 = vmatpush1.bf16.msra.mxu0 %v4019_v15 }
  0x14   :  { %384 = vmatprep.subr.bf16.mxu0 %v4025_v16 }
  0x17   :  { %385 = vmatpush1.bf16.msra.mxu0 %v4023_v17 }
  0x18   :  { %386 = vmatprep.subr.bf16.mxu0 %v4029_v18 }
  0x1b   :  { %387 = vmatpush1.bf16.msra.mxu0 %v4027_v19 }
  0x1c   :  { %388 = vmatprep.subr.bf16.mxu0 %v4033_v20 }
  0x1f   :  { %389 = vmatpush1.bf16.msra.mxu0 %v4031_v21 }
  0x20   :  { %390 = vmatprep.subr.bf16.mxu0 %v4037_v22 }
  0x23   :  { %391 = vmatpush1.bf16.msra.mxu0 %v4035_v23 }
  0x24   :  { %392 = vmatprep.subr.bf16.mxu0 %v4041_v41 }
  0x27   :  { %393 = vmatpush1.bf16.msra.mxu0 %v4039_v42 }
  0xdd   :  { %v106_v25 = vpop.f32.mrb[0].mxu0 }
  0xde   :  { %v107_v26 = vadd.f32 %v3254_v24, %v106_v25  ;;  %v3672_v27 = vpop.f32.mrb[1].mxu0 }
  0xdf   :  { %v109_v28 = vpop.f32.mrb[2].mxu0 }
  0xe0   :  { %v110_v29 = vadd.f32 %v3254_v24, %v109_v28  ;;  %v3673_v30 = vpop.f32.mrb[3].mxu0  ;;  %4203 = vtanh.f32 %v107_v26 }
  0xe2   :  { %4205 = vtanh.f32 %v110_v29 }
  0xea   :  { %v4204_v31 = vpop.eup %4203 }
  0xec   :  { %v4206_v32 = vpop.eup %4205 }
  0xed   :  { %v115_v34 = vpack.c.bf16 %v4206_v32, %v4204_v31 }
  0xef   :  { %3683 = vmatmul.mubr.msk.bf16.vlgmr.msra.gmra.mrb[0].mxu1 %vm155_vm2, %v115_v34 }
  0xf0   :  { %3687 = vmatpush3.bf16.msra.mxu1 %v4014_v33  ;;  %3702 = vmatprep.mubr.msk.bf16.mxu1 %vm4266_vm0, %v4265_v0 }
  0xf1   :  { %3688 = vmatprep.subr.bf16.mxu1 %v4265_v0 }
  0xf4   :  { %3689 = vmatpush3.bf16.msra.mxu1 %v4018_v35 }
  0xf5   :  { %3690 = vmatprep.subr.bf16.mxu1 %v4265_v0 }
  0xf8   :  { %3691 = vmatpush3.bf16.msra.mxu1 %v4022_v36 }
  0xf9   :  { %3692 = vmatprep.subr.bf16.mxu1 %v4265_v0 }
  0xfc   :  { %3693 = vmatpush3.bf16.msra.mxu1 %v4026_v37 }
  0xfd   :  { %3694 = vmatprep.subr.bf16.mxu1 %v4265_v0 }
 0x100   :  { %3695 = vmatpush3.bf16.msra.mxu1 %v4030_v38 }
 0x101   :  { %3696 = vmatprep.subr.bf16.mxu1 %v4265_v0 }
 0x104   :  { %3697 = vmatpush3.bf16.msra.mxu1 %v4034_v39 }
 0x105   :  { %3698 = vmatprep.subr.bf16.mxu1 %v4265_v0 }
 0x108   :  { %3699 = vmatpush3.bf16.msra.mxu1 %v4038_v40 }
 0x109   :  { %3700 = vmatprep.subr.bf16.mxu1 %v4265_v0 }
 0x10c   :  { %3701 = vmatpush3.bf16.msra.mxu1 %v4042_v43 }
 0x1c2   :  { %v193_v46 = vpop.f32.mrb[0].mxu1 }
 0x1c3   :  { %v3684_v47 = vpop.f32.mrb[1].mxu1  ;;  %v4456_v49 = vadd.f32 %v3258_v45, %v193_v46 }
 0x1c4   :  { %v196_v48 = vpop.f32.mrb[2].mxu1 }
 0x1c5   :  { %v4458_v50 = vadd.f32 %v3258_v45, %v196_v48  ;;  %v3685_v51 = vpop.f32.mrb[3].mxu1 }
 0x1c7   :  { %v200_v52 = vpack.c.bf16 %v4458_v50, %v4456_v49 }
 0x1c9   :  { %411 = vmatmul.mubr.bf16.vlgmr.msra.gmra.mrb[4].mxu0 %v200_v52  ;;  %3703 = vmatmul.mubr.bf16.vlgmr.msra.gmra.mrb[4].mxu1 %v200_v52 }
 0x29c   :  { %v412_v61 = vpop.f32.mrb[4].mxu0  ;;  %v455_v62 = vpop.f32.mrb[4].mxu1 }
 0x29d   :  { %v456_v63 = vadd.f32 %v455_v62, %v246_v58  ;;  %v414_v1 = vpop.f32.mrb[5].mxu0  ;;  %v3704_v2 = vpop.f32.mrb[5].mxu1  ;;  %v413_v16 = vadd.f32 %v412_v61, %v238_v9 }
 0x29e   :  { %v415_v3 = vadd.f32 %v414_v1, %v242_v59  ;;  %v416_v4 = vpop.f32.mrb[6].mxu0  ;;  %v458_v5 = vpop.f32.mrb[6].mxu1 }
 0x29f   :  { %v484_v6 = vpack.c.bf16 %v456_v63, %v456_v63  ;;  %v418_v7 = vpop.f32.mrb[7].mxu0  ;;  %v3705_v8 = vpop.f32.mrb[7].mxu1  ;;  %v459_v11 = vadd.f32 %v458_v5, %v246_v58  ;;  %v417_v18 = vadd.f32 %v416_v4, %v238_v9  ;;  %v466_v19 = vmul.f32 1.442695, %v413_v16 }
 0x2a0   :  { %v476_v10 = vmul.f32 1.442695, %v415_v3  ;;  %v419_v13 = vadd.f32 %v418_v7, %v242_v59  ;;  %v474_v20 = vadd.f32 1.0, %v415_v3  ;;  %vm472_vm4 = vcmp.gt.f32.partialorder %v415_v3, 0.0 }
 0x2a1   :  { %v529_v12 = vsel %vm527_vm3, %v484_v6, 0  ;;  %3998 = vmatprep.subr.msk.bf16.mxu0 %vm527_vm3, %v484_v6  ;;  %v485_v14 = vpack.c.bf16 %v459_v11, %v459_v11  ;;  %v468_v21 = vmul.f32 1.442695, %v417_v18  ;;  %v464_v37 = vadd.f32 1.0, %v413_v16  ;;  %v4519_v11 = vld [vmem:[%s5331_s9 + $0x10] sm:$0xff] }
 0x2a2   :  { %4207 = vpow2.f32 %v476_v10  ;;  %3707 = vmatpush3.bf16.msra.mxu0 %v529_v12  ;;  %v478_v15 = vmul.f32 1.442695, %v419_v13  ;;  %v475_v24 = vadd.f32 1.0, %v419_v13  ;;  %vm473_vm5 = vcmp.gt.f32.partialorder %v419_v13, 0.0  ;;  %v4524_v12 = vld [vmem:[%s5331_s9 + $0x18] sm:$0xff] }
 0x2a3   :  { %3742 = vmatprep.subr.bf16.mxu0 %v4265_v0  ;;  %v669_v17 = vsel %vm527_vm3, %v485_v14, 0  ;;  %3999 = vmatprep.subr.msk.bf16.mxu1 %vm527_vm3, %v485_v14  ;;  %vm462_vm6 = vcmp.gt.f32.partialorder %v413_v16, 0.0  ;;  %v465_v43 = vadd.f32 1.0, %v417_v18  ;;  %vm463_vm7 = vcmp.gt.f32.partialorder %v417_v18, 0.0  ;;  %v4529_v14 = vld [vmem:[%s5331_s9] sm:$0xff] }
 0x2a4   :  { %4209 = vpow2.f32 %v478_v15  ;;  %3725 = vmatpush3.bf16.msra.mxu1 %v669_v17  ;;  %v4534_v15 = vld [vmem:[%s5331_s9 + $0x8] sm:$0xff] }
 0x2a5   :  { %3762 = vmatprep.subr.bf16.mxu1 %v4265_v0  ;;  %4211 = vpow2.f32 %v466_v19 }
 0x2a6   :  { %4213 = vpow2.f32 %v468_v21 }
 0x2ac   :  { %v4208_v22 = vpop.eup %4207 }
 0x2ad   :  { %v480_v23 = vsel %vm472_vm4, %v474_v20, %v4208_v22 }
 0x2ae   :  { %v482_v25 = vpack.c.bf16 %v480_v23, %v480_v23  ;;  %v914_v26 = vrot.slane %v480_v23, 4  ;;  %v4210_v27 = vpop.eup %4209 }
 0x2af   :  { %v481_v29 = vsel %vm473_vm5, %v475_v24, %v4210_v27  ;;  %v4212_v35 = vpop.eup %4211 }
 0x2b0   :  { %v915_v28 = vadd.f32 %v914_v26, %v480_v23  ;;  %486 = vxpose.xlu0.c.b16.start.end [1/1] (short) %v482_v25, 128  ;;  %v920_v30 = vrot.slane %v481_v29, 4  ;;  %v4214_v40 = vpop.eup %4213  ;;  %v4484_v41 = vsel %vm462_vm6, %v464_v37, %v4212_v35  ;;  %v483_v52 = vpack.c.bf16 %v481_v29, %v481_v29  ;;  %v4543_v25 = vld [vmem:[%s5331_s9 + $0x30] sm:$0xff]  ;;  %v4548_v26 = vld [vmem:[%s5331_s9 + $0x38] sm:$0xff] }
 0x2b1   :  { %v4489_v47 = vsel %vm463_vm7, %v465_v43, %v4214_v40  ;;  %v4574_v40 = vld [vmem:[%s5331_s9 + $0x58] sm:$0xff]  ;;  %v4579_v43 = vld [vmem:[%s5331_s9 + $0x40] sm:$0xff] }
 0x2b2   :  { %v916_v31 = vrot.slane %v915_v28, 2  ;;  %v921_v32 = vadd.f32 %v920_v30, %v481_v29  ;;  %v4558_v29 = vld [vmem:[%s5331_s9 + $0x28] sm:$0xff] }
 0x2b4   :  { %v917_v33 = vadd.f32 %v916_v31, %v915_v28  ;;  %v922_v34 = vrot.slane %v921_v32, 2  ;;  %v4553_v28 = vld [vmem:[%s5331_s9 + $0x20] sm:$0xff] }
 0x2b6   :  { %v918_v36 = vrot.slane %v917_v33, 1  ;;  %v923_v38 = vadd.f32 %v922_v34, %v921_v32 }
 0x2b8   :  { %v919_v39 = vadd.f32 %v918_v36, %v917_v33  ;;  %v924_v42 = vrot.slane %v923_v38, 1 }
 0x2ba   :  { %v4487_v45 = vmul.f32 %v919_v39, %v4484_v41  ;;  %v925_v46 = vadd.f32 %v924_v42, %v923_v38  ;;  %v4569_v39 = vld [vmem:[%s5331_s9 + $0x50] sm:$0xff] }
 0x2bc   :  { %v4492_v48 = vmul.f32 %v925_v46, %v4489_v47  ;;  %v4584_v46 = vld [vmem:[%s5331_s9 + $0x48] sm:$0xff] }
 0x2be   :  { %v928_v51 = vpack.c.bf16 %v4492_v48, %v4487_v45  ;;  %v4053_v45 = vld [vmem:[%s5332_s4 + $0x10] sm:$0xff]   ;;  %v4054_v48 = vld [vmem:[%s5332_s4 + $0x18] sm:$0xff]  }
 0x2cd   :  { %628 = vxpose.xlu0.c.b16.start.end [1/1] (short) %v483_v52, 128 }
 0x316   :  { %v494_v53 = vpop.trf.xlu0 }
 0x317   :  { %3708 = vmatprep.mubr.msk.bf16.mxu0 %vm502_vm8, %v494_v53 }
 0x31a   :  { %v495_v56 = vpop.trf.xlu0 }
 0x31b   :  { %3709 = vmatmul.mubr.msk.bf16.vlgmr.msra.gmra.mrb[8].mxu0 %vm502_vm8, %v495_v56 }
 0x31e   :  { %v496_v58 = vpop.trf.xlu0 }
 0x31f   :  { %3712 = vmatprep.mubr.msk.bf16.mxu0 %vm502_vm8, %v496_v58 }
 0x322   :  { %v497_v59 = vpop.trf.xlu0 }
 0x323   :  { %3713 = vmatmul.mubr.msk.bf16.gmra.mrb[12].mxu0 %vm502_vm8, %v497_v59 }
 0x326   :  { %v498_v61 = vpop.trf.xlu0 }
 0x327   :  { %3716 = vmatprep.mubr.msk.bf16.mxu0 %vm502_vm8, %v498_v61 }
 0x32a   :  { %v499_v62 = vpop.trf.xlu0 }
 0x32b   :  { %3717 = vmatmul.mubr.msk.bf16.gmra.mrb[16].mxu0 %vm502_vm8, %v499_v62 }
 0x32e   :  { %v500_v63 = vpop.trf.xlu0 }
 0x32f   :  { %3720 = vmatprep.mubr.msk.bf16.mxu0 %vm502_vm8, %v500_v63 }
 0x332   :  { %v501_v1 = vpop.trf.xlu0 }
 0x333   :  { %3721 = vmatmul.mubr.msk.bf16.gmra.mrb[20].mxu0 %vm502_vm8, %v501_v1 }
 0x334   :  { %3758 = vmatprep.mubr.msk.bf16.mxu0 %vm4266_vm0, %v4265_v0 }
 0x336   :  { %v636_v2 = vpop.trf.xlu0 }
 0x337   :  { %3726 = vmatprep.mubr.msk.bf16.mxu1 %vm502_vm8, %v636_v2  ;;  %v4595_v2 = vld [vmem:[%s5331_s9 + $0x70] sm:$0xff] }
 0x33a   :  { %v637_v3 = vpop.trf.xlu0 }
 0x33b   :  { %3727 = vmatmul.mubr.msk.bf16.vlgmr.msra.gmra.mrb[8].mxu1 %vm502_vm8, %v637_v3  ;;  %v4600_v3 = vld [vmem:[%s5331_s9 + $0x78] sm:$0xff] }
 0x33e   :  { %v638_v4 = vpop.trf.xlu0 }
 0x33f   :  { %3730 = vmatprep.mubr.msk.bf16.mxu1 %vm502_vm8, %v638_v4 }
 0x342   :  { %v639_v5 = vpop.trf.xlu0 }
 0x343   :  { %3731 = vmatmul.mubr.msk.bf16.gmra.mrb[12].mxu1 %vm502_vm8, %v639_v5  ;;  %v4605_v5 = vld [vmem:[%s5331_s9 + $0x60] sm:$0xff] }
 0x346   :  { %v640_v6 = vpop.trf.xlu0 }
 0x347   :  { %3734 = vmatprep.mubr.msk.bf16.mxu1 %vm502_vm8, %v640_v6  ;;  %v4610_v6 = vld [vmem:[%s5331_s9 + $0x68] sm:$0xff] }
 0x34a   :  { %v641_v7 = vpop.trf.xlu0 }
 0x34b   :  { %3735 = vmatmul.mubr.msk.bf16.gmra.mrb[16].mxu1 %vm502_vm8, %v641_v7 }
 0x34e   :  { %v642_v8 = vpop.trf.xlu0 }
 0x34f   :  { %3738 = vmatprep.mubr.msk.bf16.mxu1 %vm502_vm8, %v642_v8 }
 0x352   :  { %v643_v9 = vpop.trf.xlu0 }
 0x353   :  { %3739 = vmatmul.mubr.msk.bf16.gmra.mrb[20].mxu1 %vm502_vm8, %v643_v9 }
 0x354   :  { %3778 = vmatprep.mubr.msk.bf16.mxu1 %vm4266_vm0, %v4265_v0 }
 0x3ee   :  { %v3710_v10 = vpop.f32.mrb[8].mxu0 }
 0x3ef   :  { %v565_v13 = vpop.f32.mrb[9].mxu0  ;;  %v786_v17 = vmul.f32 %v3710_v10, %v4519_v11 }
 0x3f0   :  { %v3711_v16 = vpop.f32.mrb[10].mxu0  ;;  %v784_v20 = vmul.f32 %v4529_v14, %v565_v13 }
 0x3f1   :  { %v787_v18 = vmul.f32 %v3711_v16, %v4524_v12  ;;  %v568_v19 = vpop.f32.mrb[11].mxu0 }
 0x3f2   :  { %v785_v21 = vmul.f32 %v4534_v15, %v568_v19 }
 0x3f3   :  { %v817_v22 = vpack.c.bf16 %v787_v18, %v786_v17 }
 0x3f4   :  { %v816_v23 = vpack.c.bf16 %v785_v21, %v784_v20 }
 0x3f6   :  { %v3714_v24 = vpop.f32.mrb[12].mxu0  ;;  %3743 = vmatpush3.bf16.msra.mxu0 %v816_v23 }
 0x3f7   :  { %v581_v27 = vpop.f32.mrb[13].mxu0  ;;  %3744 = vmatprep.subr.bf16.mxu0 %v4265_v0  ;;  %v790_v31 = vmul.f32 %v3714_v24, %v4543_v25 }
 0x3f8   :  { %v3715_v30 = vpop.f32.mrb[14].mxu0  ;;  %v788_v34 = vmul.f32 %v4553_v28, %v581_v27 }
 0x3f9   :  { %v791_v32 = vmul.f32 %v3715_v30, %v4548_v26  ;;  %v584_v33 = vpop.f32.mrb[15].mxu0 }
 0x3fa   :  { %v789_v35 = vmul.f32 %v4558_v29, %v584_v33  ;;  %3745 = vmatpush3.bf16.msra.mxu0 %v817_v22 }
 0x3fb   :  { %v819_v36 = vpack.c.bf16 %v791_v32, %v790_v31  ;;  %3746 = vmatprep.subr.bf16.mxu0 %v4265_v0  ;;  %v4043_v31 = vld [vmem:[%s5330_s10] sm:$0xff]   ;;  %v832_v32 = vpack.c.bf16 %v4484_v41, %v4484_v41 }
 0x3fc   :  { %v818_v37 = vpack.c.bf16 %v789_v35, %v788_v34 }
 0x3fe   :  { %v3718_v38 = vpop.f32.mrb[16].mxu0  ;;  %3747 = vmatpush3.bf16.msra.mxu0 %v818_v37 }
 0x3ff   :  { %v597_v42 = vpop.f32.mrb[17].mxu0  ;;  %3748 = vmatprep.subr.bf16.mxu0 %v4265_v0  ;;  %v794_v53 = vmul.f32 %v3718_v38, %v4569_v39 }
 0x400   :  { %v3719_v52 = vpop.f32.mrb[18].mxu0  ;;  %v792_v59 = vmul.f32 %v4579_v43, %v597_v42 }
 0x401   :  { %v795_v56 = vmul.f32 %v3719_v52, %v4574_v40  ;;  %v600_v58 = vpop.f32.mrb[19].mxu0 }
 0x402   :  { %v793_v61 = vmul.f32 %v4584_v46, %v600_v58  ;;  %3749 = vmatpush3.bf16.msra.mxu0 %v819_v36 }
 0x403   :  { %v821_v62 = vpack.c.bf16 %v795_v56, %v794_v53  ;;  %3750 = vmatprep.subr.bf16.mxu0 %v4265_v0 }
 0x404   :  { %v820_v63 = vpack.c.bf16 %v793_v61, %v792_v59 }
 0x406   :  { %v3722_v1 = vpop.f32.mrb[20].mxu0  ;;  %3751 = vmatpush3.bf16.msra.mxu0 %v820_v63  ;;  %v4047_v63 = vld [vmem:[%s5330_s10 + $0x20] sm:$0xff]  }
 0x407   :  { %v613_v4 = vpop.f32.mrb[21].mxu0  ;;  %3752 = vmatprep.subr.bf16.mxu0 %v4265_v0  ;;  %v798_v8 = vmul.f32 %v3722_v1, %v4595_v2 }
 0x408   :  { %v3723_v7 = vpop.f32.mrb[22].mxu0  ;;  %v796_v13 = vmul.f32 %v4605_v5, %v613_v4 }
 0x409   :  { %v799_v9 = vmul.f32 %v3723_v7, %v4600_v3  ;;  %v616_v10 = vpop.f32.mrb[23].mxu0 }
 0x40a   :  { %v797_v16 = vmul.f32 %v4610_v6, %v616_v10  ;;  %3753 = vmatpush3.bf16.msra.mxu0 %v821_v62 }
 0x40b   :  { %v823_v17 = vpack.c.bf16 %v799_v9, %v798_v8  ;;  %3754 = vmatprep.subr.bf16.mxu0 %v4265_v0 }
 0x40c   :  { %v822_v18 = vpack.c.bf16 %v797_v16, %v796_v13  ;;  %v4049_v16 = vld [vmem:[%s5330_s10 + $0x30] sm:$0xff]  }
 0x40e   :  { %v3728_v19 = vpop.f32.mrb[8].mxu1  ;;  %3755 = vmatpush3.bf16.msra.mxu0 %v822_v18  ;;  %v4056_v18 = vld [vmem:[%s5332_s4 + $0x28] sm:$0xff]  }
 0x40f   :  { %v802_v20 = vmul.f32 %v3728_v19, %v4519_v11  ;;  %v705_v21 = vpop.f32.mrb[9].mxu1  ;;  %3756 = vmatprep.subr.bf16.mxu0 %v4265_v0  ;;  %v4057_v19 = vld [vmem:[%s5332_s4 + $0x30] sm:$0xff]  }
 0x410   :  { %v800_v22 = vmul.f32 %v4529_v14, %v705_v21  ;;  %v3729_v23 = vpop.f32.mrb[10].mxu1 }
 0x411   :  { %v803_v24 = vmul.f32 %v3729_v23, %v4524_v12  ;;  %v708_v27 = vpop.f32.mrb[11].mxu1  ;;  %v4044_v12 = vld [vmem:[%s5330_s10 + $0x8] sm:$0xff]  }
 0x412   :  { %v801_v30 = vmul.f32 %v4534_v15, %v708_v27  ;;  %3757 = vmatpush3.bf16.msra.mxu0 %v823_v17 }
 0x413   :  { %v825_v11 = vpack.c.bf16 %v803_v24, %v802_v20  ;;  %3782 = vmatprep.subr.bf16.mxu0 %v4265_v0  ;;  %v4058_v20 = vld [vmem:[%s5332_s4 + $0x38] sm:$0xff]  }
 0x414   :  { %v824_v33 = vpack.c.bf16 %v801_v30, %v800_v22 }
 0x415   :  { %3759 = vmatmul.mubr.bf16.vlgmr.msra.gmra.mrb[24].mxu0 %v832_v32 }
 0x416   :  { %v3732_v14 = vpop.f32.mrb[12].mxu1  ;;  %3763 = vmatpush3.bf16.msra.mxu1 %v824_v33  ;;  %3783 = vmatpush3.bf16.msra.mxu0 %v4043_v31 }
 0x417   :  { %v806_v15 = vmul.f32 %v3732_v14, %v4543_v25  ;;  %v721_v34 = vpop.f32.mrb[13].mxu1  ;;  %3764 = vmatprep.subr.bf16.mxu1 %v4265_v0  ;;  %3784 = vmatprep.subr.bf16.mxu0 %v4265_v0  ;;  %v4045_v25 = vld [vmem:[%s5330_s10 + $0x10] sm:$0xff]  }
 0x418   :  { %v804_v41 = vmul.f32 %v4553_v28, %v721_v34  ;;  %v3733_v35 = vpop.f32.mrb[14].mxu1  ;;  %3798 = vmatprep.mubr.msk.bf16.mxu0 %vm4266_vm0, %v4265_v0 }
 0x419   :  { %v807_v36 = vmul.f32 %v3733_v35, %v4548_v26  ;;  %v724_v37 = vpop.f32.mrb[15].mxu1  ;;  %v4046_v26 = vld [vmem:[%s5330_s10 + $0x18] sm:$0xff]  }
 0x41a   :  { %v805_v38 = vmul.f32 %v4558_v29, %v724_v37  ;;  %3765 = vmatpush3.bf16.msra.mxu1 %v825_v11  ;;  %3785 = vmatpush3.bf16.msra.mxu0 %v4044_v12 }
 0x41b   :  { %v827_v42 = vpack.c.bf16 %v807_v36, %v806_v15  ;;  %3766 = vmatprep.subr.bf16.mxu1 %v4265_v0  ;;  %3786 = vmatprep.subr.bf16.mxu0 %v4265_v0 }
 0x41c   :  { %v826_v28 = vpack.c.bf16 %v805_v38, %v804_v41 }
 0x41e   :  { %v3736_v52 = vpop.f32.mrb[16].mxu1  ;;  %3767 = vmatpush3.bf16.msra.mxu1 %v826_v28  ;;  %3787 = vmatpush3.bf16.msra.mxu0 %v4045_v25 }
 0x41f   :  { %v810_v29 = vmul.f32 %v3736_v52, %v4569_v39  ;;  %v737_v53 = vpop.f32.mrb[17].mxu1  ;;  %3768 = vmatprep.subr.bf16.mxu1 %v4265_v0  ;;  %3788 = vmatprep.subr.bf16.mxu0 %v4265_v0 }
 0x420   :  { %v808_v56 = vmul.f32 %v4579_v43, %v737_v53  ;;  %v3737_v58 = vpop.f32.mrb[18].mxu1  ;;  %v3312_v53 = vld [vmem:[%s5329_s11 + $0x5] ss:$0 sm:$0xff] }
 0x421   :  { %v811_v59 = vmul.f32 %v3737_v58, %v4574_v40  ;;  %v740_v61 = vpop.f32.mrb[19].mxu1  ;;  %v4048_v40 = vld [vmem:[%s5330_s10 + $0x28] sm:$0xff]  }
 0x422   :  { %v809_v62 = vmul.f32 %v4584_v46, %v740_v61  ;;  %3769 = vmatpush3.bf16.msra.mxu1 %v827_v42  ;;  %3789 = vmatpush3.bf16.msra.mxu0 %v4046_v26 }
 0x423   :  { %v829_v39 = vpack.c.bf16 %v811_v59, %v810_v29  ;;  %3770 = vmatprep.subr.bf16.mxu1 %v4265_v0  ;;  %3790 = vmatprep.subr.bf16.mxu0 %v4265_v0 }
 0x424   :  { %v828_v1 = vpack.c.bf16 %v809_v62, %v808_v56 }
 0x426   :  { %v3740_v4 = vpop.f32.mrb[20].mxu1  ;;  %3771 = vmatpush3.bf16.msra.mxu1 %v828_v1  ;;  %3791 = vmatpush3.bf16.msra.mxu0 %v4047_v63 }
 0x427   :  { %v814_v43 = vmul.f32 %v3740_v4, %v4595_v2  ;;  %v753_v46 = vpop.f32.mrb[21].mxu1  ;;  %3772 = vmatprep.subr.bf16.mxu1 %v4265_v0  ;;  %3792 = vmatprep.subr.bf16.mxu0 %v4265_v0  ;;  %v4059_v4 = vld [vmem:[%s5333_s5] ss:$8 sps:$4 sm:$0xff]  }
 0x428   :  { %v812_v7 = vmul.f32 %v4605_v5, %v753_v46  ;;  %v3741_v8 = vpop.f32.mrb[22].mxu1  ;;  %v833_v5 = vpack.c.bf16 %v4489_v47, %v4489_v47  ;;  %v4052_v47 = vld [vmem:[%s5332_s4 + $0x8] sm:$0xff]  }
 0x429   :  { %v815_v9 = vmul.f32 %v3741_v8, %v4600_v3  ;;  %v756_v10 = vpop.f32.mrb[23].mxu1  ;;  %v4050_v3 = vld [vmem:[%s5330_s10 + $0x38] sm:$0xff]  }
 0x42a   :  { %v813_v13 = vmul.f32 %v4610_v6, %v756_v10  ;;  %3773 = vmatpush3.bf16.msra.mxu1 %v829_v39  ;;  %3793 = vmatpush3.bf16.msra.mxu0 %v4048_v40  ;;  %v4051_v6 = vld [vmem:[%s5332_s4] sm:$0xff]  }
 0x42b   :  { %v831_v2 = vpack.c.bf16 %v815_v9, %v814_v43  ;;  %3774 = vmatprep.subr.bf16.mxu1 %v4265_v0  ;;  %3794 = vmatprep.subr.bf16.mxu0 %v4265_v0  ;;  %v4061_v40 = vld [vmem:[%s5333_s5 + $0x4] ss:$8 sps:$4 sm:$0xff]   ;;  %v4062_v43 = vld [vmem:[%s5333_s5 + $0x10] ss:$8 sps:$4 sm:$0xff]  }
 0x42c   :  { %v830_v17 = vpack.c.bf16 %v813_v13, %v812_v7 }
 0x42e   :  { %3775 = vmatpush3.bf16.msra.mxu1 %v830_v17  ;;  %3795 = vmatpush3.bf16.msra.mxu0 %v4049_v16  ;;  %v4065_v17 = vld [vmem:[%s5333_s5 + $0x20] ss:$8 sps:$4 sm:$0xff]  }
 0x42f   :  { %3776 = vmatprep.subr.bf16.mxu1 %v4265_v0  ;;  %3796 = vmatprep.subr.bf16.mxu0 %v4265_v0 }
 0x432   :  { %3777 = vmatpush3.bf16.msra.mxu1 %v831_v2  ;;  %3797 = vmatpush3.bf16.msra.mxu0 %v4050_v3  ;;  %v4067_v2 = vld [vmem:[%s5333_s5 + $0x24] ss:$8 sps:$4 sm:$0xff]   ;;  %v4070_v3 = vld [vmem:[%s5333_s5 + $0x34] ss:$8 sps:$4 sm:$0xff]  }
 0x433   :  { %3802 = vmatprep.subr.bf16.mxu1 %v4265_v0  ;;  %1309 = vmatprep.subr.bf16.mxu0 %v4061_v40 }
 0x435   :  { %3779 = vmatmul.mubr.bf16.vlgmr.msra.gmra.mrb[24].mxu1 %v833_v5  ;;  %3799 = vmatmul.mubr.bf16.vlgmr.msra.gmra.mrb[28].mxu0 %v928_v51  ;;  %v4055_v51 = vld [vmem:[%s5332_s4 + $0x20] sm:$0xff]   ;;  %v4068_v5 = vld [vmem:[%s5333_s5 + $0x30] ss:$8 sps:$4 sm:$0xff]  }
 0x436   :  { %3818 = vmatprep.mubr.msk.bf16.mxu1 %vm4266_vm0, %v4265_v0  ;;  %1341 = vmatprep.mubr.bf16.mxu0 %v4267_v44 }
 0x437   :  { %3803 = vmatpush3.bf16.msra.mxu1 %v4051_v6  ;;  %1310 = vmatpush1.bf16.msra.mxu0 %v4059_v4  ;;  %v4073_v6 = vld [vmem:[%s5333_s5 + $0x44] ss:$8 sps:$4 sm:$0xff]  }
 0x438   :  { %3804 = vmatprep.subr.bf16.mxu1 %v4265_v0 }
 0x43b   :  { %3805 = vmatpush3.bf16.msra.mxu1 %v4052_v47  ;;  %v4071_v47 = vld [vmem:[%s5333_s5 + $0x40] ss:$8 sps:$4 sm:$0xff]  }
 0x43c   :  { %3806 = vmatprep.subr.bf16.mxu1 %v4265_v0 }
 0x43f   :  { %3807 = vmatpush3.bf16.msra.mxu1 %v4053_v45  ;;  %v4076_v45 = vld [vmem:[%s5333_s5 + $0x54] ss:$8 sps:$4 sm:$0xff]  }
 0x440   :  { %3808 = vmatprep.subr.bf16.mxu1 %v4265_v0 }
 0x443   :  { %3809 = vmatpush3.bf16.msra.mxu1 %v4054_v48  ;;  %v4074_v48 = vld [vmem:[%s5333_s5 + $0x50] ss:$8 sps:$4 sm:$0xff]  }
 0x444   :  { %3810 = vmatprep.subr.bf16.mxu1 %v4265_v0 }
 0x447   :  { %3811 = vmatpush3.bf16.msra.mxu1 %v4055_v51  ;;  %v4077_v51 = vld [vmem:[%s5333_s5 + $0x60] ss:$8 sps:$4 sm:$0xff]  }
 0x448   :  { %3812 = vmatprep.subr.bf16.mxu1 %v4265_v0 }
 0x44b   :  { %3813 = vmatpush3.bf16.msra.mxu1 %v4056_v18  ;;  %v4079_v18 = vld [vmem:[%s5333_s5 + $0x64] ss:$8 sps:$4 sm:$0xff]  }
 0x44c   :  { %3814 = vmatprep.subr.bf16.mxu1 %v4265_v0 }
 0x44f   :  { %3815 = vmatpush3.bf16.msra.mxu1 %v4057_v19  ;;  %v4082_v19 = vld [vmem:[%s5333_s5 + $0x74] ss:$8 sps:$4 sm:$0xff]  }
 0x450   :  { %3816 = vmatprep.subr.bf16.mxu1 %v4265_v0 }
 0x453   :  { %3817 = vmatpush3.bf16.msra.mxu1 %v4058_v20  ;;  %v4080_v20 = vld [vmem:[%s5333_s5 + $0x70] ss:$8 sps:$4 sm:$0xff]  }
 0x4e8   :  { %v868_v21 = vpop.f32.mrb[24].mxu0 }
 0x4e9   :  { %v3760_v22 = vpop.f32.mrb[25].mxu0 }
 0x4ea   :  { %v871_v23 = vpop.f32.mrb[26].mxu0 }
 0x4eb   :  { %v3761_v24 = vpop.f32.mrb[27].mxu0 }
 0x508   :  { %v908_v27 = vpop.f32.mrb[24].mxu1  ;;  %v1027_v30 = vpop.f32.mrb[28].mxu0 }
 0x509   :  { %v1028_v31 = vadd.f32 1e-30, %v1027_v30  ;;  %v3780_v32 = vpop.f32.mrb[25].mxu1  ;;  %v3800_v11 = vpop.f32.mrb[29].mxu0 }
 0x50a   :  { %v911_v33 = vpop.f32.mrb[26].mxu1  ;;  %v1030_v14 = vpop.f32.mrb[30].mxu0  ;;  %v3321_v11 = vld [vmem:[%s5329_s11 + $0x6] ss:$0 sm:$0xff] }
 0x50b   :  { %4215 = vrcp.f32 %v1028_v31  ;;  %v1031_v12 = vadd.f32 1e-30, %v1030_v14  ;;  %v3781_v15 = vpop.f32.mrb[27].mxu1  ;;  %v3801_v34 = vpop.f32.mrb[31].mxu0 }
 0x50c   :  { %v3322_v15 = vld [vmem:[%s5329_s11 + $0x7] ss:$0 sm:$0xff] }
 0x50d   :  { %4217 = vrcp.f32 %v1031_v12 }
 0x515   :  { %v4216_v41 = vpop.eup %4215 }
 0x516   :  { %v1036_v35 = vmul.f32 %v4216_v41, %v1028_v31 }
 0x517   :  { %v4218_v36 = vpop.eup %4217 }
 0x518   :  { %v1038_v37 = vsub.f32 2.0, %v1036_v35  ;;  %v1037_v38 = vmul.f32 %v4218_v36, %v1031_v12 }
 0x51a   :  { %v1040_v25 = vmul.f32 %v4216_v41, %v1038_v37  ;;  %v1039_v42 = vsub.f32 2.0, %v1037_v38  ;;  %v4083_v37 = vld [vmem:[%s5334_s6 + $0x40] sm:$0xff]  }
 0x51b   :  { %v4084_v38 = vld [vmem:[%s5334_s6] sm:$0xff]   ;;  %3541 = vmatprep.subr.bf16.mxu1 %v4083_v37 }
 0x51c   :  { %v1042_v28 = vmul.f32 %v1040_v25, %v868_v21  ;;  %v1041_v52 = vmul.f32 %v4218_v36, %v1039_v42  ;;  %v4085_v25 = vld [vmem:[%s5334_s6 + $0x48] sm:$0xff]  }
 0x51d   :  { %v4086_v42 = vld [vmem:[%s5334_s6 + $0x8] sm:$0xff]  }
 0x51e   :  { %v1043_v26 = vmul.f32 %v1041_v52, %v908_v27  ;;  %v4088_v52 = vld [vmem:[%s5334_s6 + $0x10] sm:$0xff]  }
 0x520   :  { %v1044_v29 = vpack.c.bf16 %v1043_v26, %v1042_v28  ;;  %v4087_v28 = vld [vmem:[%s5334_s6 + $0x50] sm:$0xff]   ;;  %v4089_v26 = vld [vmem:[%s5334_s6 + $0x58] sm:$0xff]  }
 0x522   :  { %3819 = vmatmul.mubr.bf16.vlgmr.msra.gmra.mrb[28].mxu1 %v1044_v29  ;;  %v4090_v29 = vld [vmem:[%s5334_s6 + $0x18] sm:$0xff]  }
 0x523   :  { %3542 = vmatpush3.bf16.msra.mxu1 %v4084_v38 }
 0x524   :  { %3543 = vmatprep.subr.bf16.mxu1 %v4085_v25 }
 0x527   :  { %3544 = vmatpush3.bf16.msra.mxu1 %v4086_v42 }
 0x528   :  { %3545 = vmatprep.subr.bf16.mxu1 %v4087_v28 }
 0x52b   :  { %3546 = vmatpush3.bf16.msra.mxu1 %v4088_v52 }
 0x52c   :  { %3547 = vmatprep.subr.bf16.mxu1 %v4089_v26 }
 0x52f   :  { %3548 = vmatpush3.bf16.msra.mxu1 %v4090_v29 }
 0x5f5   :  { %v1150_v56 = vpop.f32.mrb[28].mxu1 }
 0x5f6   :  { %v1151_v58 = vadd.f32 %v3312_v53, %v1150_v56  ;;  %v3820_v59 = vpop.f32.mrb[29].mxu1  ;;  %v4092_v56 = vld [vmem:[%s5334_s6 + $0x20] sm:$0xff]  }
 0x5f7   :  { %v1153_v61 = vpop.f32.mrb[30].mxu1  ;;  %v4094_v59 = vld [vmem:[%s5334_s6 + $0x28] sm:$0xff]  }
 0x5f8   :  { %v1154_v62 = vadd.f32 %v3312_v53, %v1153_v61  ;;  %v3821_v63 = vpop.f32.mrb[31].mxu1  ;;  %v1157_v39 = vadd.f32 %v1151_v58, %v4456_v49  ;;  %v4064_v49 = vld [vmem:[%s5333_s5 + $0x14] ss:$8 sps:$4 sm:$0xff]   ;;  %v4091_v53 = vld [vmem:[%s5334_s6 + $0x60] sm:$0xff]   ;;  %v4093_v58 = vld [vmem:[%s5334_s6 + $0x68] sm:$0xff]  }
 0x5f9   :  { %1311 = vmatprep.subr.bf16.mxu0 %v4064_v49  ;;  %3549 = vmatprep.subr.bf16.mxu1 %v4091_v53  ;;  %v4095_v61 = vld [vmem:[%s5334_s6 + $0x70] sm:$0xff]   ;;  %v4097_v63 = vld [vmem:[%s5334_s6 + $0x78] sm:$0xff]  }
 0x5fa   :  { %1161 = vadd.xlane.f32.xlu1 %v1157_v39  ;;  %v1158_v1 = vadd.f32 %v1154_v62, %v4458_v50  ;;  %1312 = vmatpush1.bf16.msra.mxu0 %v4062_v43  ;;  %v4096_v62 = vld [vmem:[%s5334_s6 + $0x30] sm:$0xff]  }
 0x5fb   :  { %1313 = vmatprep.subr.bf16.mxu0 %v4067_v2  ;;  %3550 = vmatpush3.bf16.msra.mxu1 %v4092_v56 }
 0x5fc   :  { %3551 = vmatprep.subr.bf16.mxu1 %v4093_v58  ;;  %v3339_v58 = vld [vmem:[%s5329_s11 + $0xa] ss:$0 sm:$0xff] }
 0x5fe   :  { %1163 = vadd.xlane.f32.xlu1 %v1158_v1  ;;  %1314 = vmatpush1.bf16.msra.mxu0 %v4065_v17 }
 0x5ff   :  { %1315 = vmatprep.subr.bf16.mxu0 %v4070_v3  ;;  %3552 = vmatpush3.bf16.msra.mxu1 %v4094_v59 }
 0x600   :  { %3553 = vmatprep.subr.bf16.mxu1 %v4095_v61 }
 0x602   :  { %1316 = vmatpush1.bf16.msra.mxu0 %v4068_v5 }
 0x603   :  { %1317 = vmatprep.subr.bf16.mxu0 %v4073_v6  ;;  %3554 = vmatpush3.bf16.msra.mxu1 %v4096_v62 }
 0x604   :  { %3555 = vmatprep.subr.bf16.mxu1 %v4097_v63 }
 0x606   :  { %1318 = vmatpush1.bf16.msra.mxu0 %v4071_v47 }
 0x607   :  { %1319 = vmatprep.subr.bf16.mxu0 %v4076_v45 }
 0x60a   :  { %1320 = vmatpush1.bf16.msra.mxu0 %v4074_v48 }
 0x60b   :  { %1321 = vmatprep.subr.bf16.mxu0 %v4079_v18 }
 0x60e   :  { %1322 = vmatpush1.bf16.msra.mxu0 %v4077_v51 }
 0x60f   :  { %1323 = vmatprep.subr.bf16.mxu0 %v4082_v19 }
 0x612   :  { %1324 = vmatpush1.bf16.msra.mxu0 %v4080_v20 }
 0x687   :  { %v1162_v50 = vpop.xlane.xlu1 %1161 }
 0x688   :  { %v1166_v46 = vmul.f32 0.0078125, %v1162_v50 }
 0x68a   :  { %v1168_v7 = vsub.f32 %v1157_v39, %v1166_v46  ;;  %v4098_v39 = vld [vmem:[%s5334_s6 + $0x38] sm:$0xff]  }
 0x68b   :  { %v1164_v8 = vpop.xlane.xlu1 %1163  ;;  %3556 = vmatpush3.bf16.msra.mxu1 %v4098_v39 }
 0x68c   :  { %v1167_v9 = vmul.f32 0.0078125, %v1164_v8  ;;  %v1170_v10 = vmul.f32 %v1168_v7, %v1168_v7  ;;  %3822 = vmatprep.subr.bf16.mxu1 %v4265_v0 }
 0x68e   :  { %v1169_v13 = vsub.f32 %v1158_v1, %v1167_v9  ;;  %1172 = vadd.xlane.f32.xlu1 %v1170_v10  ;;  %v1217_v1 = vld [vmem:[%s5329_s11 + $0x8] sm:$0x3] }
 0x68f   :  { %v1222_v4 = vrot.slane %v1217_v1, %v4475_v60  ;;  %v1226_v40 = vrot.slane %v1217_v1, %v4469_v57 }
 0x690   :  { %v1171_v16 = vmul.f32 %v1169_v13, %v1169_v13 }
 0x692   :  { %1174 = vadd.xlane.f32.xlu1 %v1171_v16 }
 0x71b   :  { %v1173_v21 = vpop.xlane.xlu1 %1172 }
 0x71c   :  { %v1176_v22 = vmul.f32 0.0078125, %v1173_v21 }
 0x71e   :  { %v1178_v23 = vadd.f32 1e-12, %v1176_v22 }
 0x71f   :  { %v1175_v24 = vpop.xlane.xlu1 %1174 }
 0x720   :  { %4219 = vrsqrt.f32 %v1178_v23  ;;  %v1177_v27 = vmul.f32 0.0078125, %v1175_v24 }
 0x722   :  { %v1179_v30 = vadd.f32 1e-12, %v1177_v27 }
 0x724   :  { %4221 = vrsqrt.f32 %v1179_v30 }
 0x72a   :  { %v4220_v31 = vpop.eup %4219 }
 0x72b   :  { %v1182_v32 = vmul.f32 %v4220_v31, %v1168_v7 }
 0x72d   :  { %v1190_v12 = vmul.f32 %v3321_v11, %v1182_v32 }
 0x72e   :  { %v4222_v33 = vpop.eup %4221 }
 0x72f   :  { %v1183_v14 = vmul.f32 %v4222_v33, %v1169_v13  ;;  %v4777_v41 = vadd.f32 %v3322_v15, %v1190_v12 }
 0x731   :  { %v1191_v34 = vmul.f32 %v3321_v11, %v1183_v14 }
 0x733   :  { %v4779_v35 = vadd.f32 %v3322_v15, %v1191_v34 }
 0x735   :  { %v1200_v36 = vpack.c.bf16 %v4779_v35, %v4777_v41 }
 0x737   :  { %1342 = vmatmul.mubr.bf16.vlgmr.msra.gmra.mrb[32].mxu0 %v1200_v36 }
 0x738   :  { %1818 = vmatprep.mubr.bf16.mxu0 %v4267_v44 }
 0x80a   :  { %v1343_v43 = vpop.f32.mrb[32].mxu0 }
 0x80b   :  { %v1344_v49 = vadd.f32 %v1343_v43, %v1222_v4  ;;  %v1345_v50 = vpop.f32.mrb[33].mxu0 }
 0x80c   :  { %v1346_v46 = vadd.f32 %v1345_v50, %v1226_v40  ;;  %v1347_v7 = vpop.f32.mrb[34].mxu0  ;;  %v4101_v50 = vld [vmem:[%s5328_s3 + $0x4] ss:$12 sps:$4 sm:$0xff]  }
 0x80d   :  { %v1356_v8 = vmul.f32 0.044715, %v1344_v49  ;;  %v1348_v9 = vadd.f32 %v1347_v7, %v1222_v4  ;;  %v1349_v10 = vpop.f32.mrb[35].mxu0  ;;  %v1352_v15 = vmul.f32 0.5, %v1344_v49  ;;  %1786 = vmatprep.subr.bf16.mxu0 %v4101_v50 }
 0x80e   :  { %v1357_v13 = vmul.f32 0.044715, %v1346_v46  ;;  %v1350_v16 = vadd.f32 %v1349_v10, %v1226_v40  ;;  %v1353_v37 = vmul.f32 0.5, %v1346_v46 }
 0x80f   :  { %v1360_v2 = vmul.f32 %v1356_v8, %v1344_v49  ;;  %v1358_v17 = vmul.f32 0.044715, %v1348_v9  ;;  %v1354_v34 = vmul.f32 0.5, %v1348_v9 }
 0x810   :  { %v1361_v3 = vmul.f32 %v1357_v13, %v1346_v46  ;;  %v1359_v5 = vmul.f32 0.044715, %v1350_v16  ;;  %v1355_v38 = vmul.f32 0.5, %v1350_v16 }
 0x811   :  { %v1364_v6 = vmul.f32 %v1360_v2, %v1344_v49  ;;  %v1362_v47 = vmul.f32 %v1358_v17, %v1348_v9 }
 0x812   :  { %v1365_v45 = vmul.f32 %v1361_v3, %v1346_v46  ;;  %v1363_v48 = vmul.f32 %v1359_v5, %v1350_v16  ;;  %v4106_v3 = vld [vmem:[%s5328_s3 + $0x20] ss:$12 sps:$4 sm:$0xff]  }
 0x813   :  { %v1368_v51 = vadd.f32 %v1364_v6, %v1344_v49  ;;  %v1366_v18 = vmul.f32 %v1362_v47, %v1348_v9  ;;  %v4099_v49 = vld [vmem:[%s5328_s3] ss:$12 sps:$4 sm:$0xff]   ;;  %v4107_v6 = vld [vmem:[%s5328_s3 + $0x30] ss:$12 sps:$4 sm:$0xff]   ;;  %v4110_v47 = vld [vmem:[%s5328_s3 + $0x38] ss:$12 sps:$4 sm:$0xff]  }
 0x814   :  { %v1367_v19 = vmul.f32 %v1363_v48, %v1350_v16  ;;  %v1369_v20 = vadd.f32 %v1365_v45, %v1346_v46  ;;  %v4102_v46 = vld [vmem:[%s5328_s3 + $0x8] ss:$12 sps:$4 sm:$0xff]   ;;  %1787 = vmatpush1.bf16.msra.mxu0 %v4099_v49  ;;  %v4113_v45 = vld [vmem:[%s5328_s3 + $0x4c] ss:$12 sps:$4 sm:$0xff]  }
 0x815   :  { %v1372_v21 = vmul.f32 0.7978846, %v1368_v51  ;;  %v1370_v22 = vadd.f32 %v1366_v18, %v1348_v9  ;;  %v4109_v5 = vld [vmem:[%s5328_s3 + $0x34] ss:$12 sps:$4 sm:$0xff]   ;;  %v4114_v51 = vld [vmem:[%s5328_s3 + $0x50] ss:$12 sps:$4 sm:$0xff]  }
 0x816   :  { %v1371_v23 = vadd.f32 %v1367_v19, %v1350_v16  ;;  %v1373_v24 = vmul.f32 0.7978846, %v1369_v20  ;;  %v4111_v48 = vld [vmem:[%s5328_s3 + $0x48] ss:$12 sps:$4 sm:$0xff]   ;;  %v4117_v18 = vld [vmem:[%s5328_s3 + $0x64] ss:$12 sps:$4 sm:$0xff]  }
 0x817   :  { %4223 = vtanh.f32 %v1372_v21  ;;  %v1374_v27 = vmul.f32 0.7978846, %v1370_v22  ;;  %v4115_v19 = vld [vmem:[%s5328_s3 + $0x60] ss:$12 sps:$4 sm:$0xff]   ;;  %v4118_v20 = vld [vmem:[%s5328_s3 + $0x68] ss:$12 sps:$4 sm:$0xff]  }
 0x818   :  { %v1375_v30 = vmul.f32 0.7978846, %v1371_v23  ;;  %4225 = vtanh.f32 %v1373_v24  ;;  %v4121_v21 = vld [vmem:[%s5328_s3 + $0x7c] ss:$12 sps:$4 sm:$0xff]   ;;  %v4119_v22 = vld [vmem:[%s5328_s3 + $0x78] ss:$12 sps:$4 sm:$0xff]  }
 0x819   :  { %4227 = vtanh.f32 %v1374_v27  ;;  %v4122_v23 = vld [vmem:[%s5328_s3 + $0x80] ss:$12 sps:$4 sm:$0xff]   ;;  %v4123_v24 = vld [vmem:[%s5328_s3 + $0x90] ss:$12 sps:$4 sm:$0xff]  }
 0x81a   :  { %4229 = vtanh.f32 %v1375_v30  ;;  %v4125_v27 = vld [vmem:[%s5328_s3 + $0x94] ss:$12 sps:$4 sm:$0xff]   ;;  %v4126_v30 = vld [vmem:[%s5328_s3 + $0x98] ss:$12 sps:$4 sm:$0xff]  }
 0x821   :  { %v4224_v31 = vpop.eup %4223 }
 0x822   :  { %v4226_v32 = vpop.eup %4225  ;;  %v1380_v11 = vadd.f32 1.0, %v4224_v31  ;;  %v4129_v31 = vld [vmem:[%s5328_s3 + $0xac] ss:$12 sps:$4 sm:$0xff]  }
 0x823   :  { %v4228_v33 = vpop.eup %4227  ;;  %v1381_v14 = vadd.f32 1.0, %v4226_v32  ;;  %v4127_v32 = vld [vmem:[%s5328_s3 + $0xa8] ss:$12 sps:$4 sm:$0xff]  }
 0x824   :  { %v4230_v12 = vpop.eup %4229  ;;  %v1382_v36 = vadd.f32 1.0, %v4228_v33  ;;  %v1384_v42 = vmul.f32 %v1380_v11, %v1352_v15  ;;  %v4130_v11 = vld [vmem:[%s5328_s3 + $0xb0] ss:$12 sps:$4 sm:$0xff]  }
 0x825   :  { %v1383_v25 = vadd.f32 1.0, %v4230_v12  ;;  %v1385_v52 = vmul.f32 %v1381_v14, %v1353_v37 }
 0x826   :  { %v1386_v28 = vmul.f32 %v1382_v36, %v1354_v34 }
 0x827   :  { %v1387_v26 = vmul.f32 %v1383_v25, %v1355_v38  ;;  %v3356_v25 = vld [vmem:[%s5329_s11 + $0xb] ss:$0 sm:$0xff] }
 0x828   :  { %v1388_v29 = vpack.c.bf16 %v1386_v28, %v1384_v42 }
 0x829   :  { %v1389_v53 = vpack.c.bf16 %v1387_v26, %v1385_v52  ;;  %v3357_v26 = vld [vmem:[%s5329_s11 + $0xc] ss:$0 sm:$0xff] }
 0x82b   :  { %1557 = vmatprep.mubr.bf16.mxu1 %v1389_v53 }
 0x82c   :  { %1558 = vmatmul.mubr.bf16.vlgmr.msra.gmra.mrb[32].mxu1 %v1388_v29 }
 0x82d   :  { %3838 = vmatprep.mubr.msk.bf16.mxu1 %vm4266_vm0, %v4265_v0  ;;  %3823 = vmatpush3.bf16.msra.mxu1 %v4102_v46 }
 0x82e   :  { %3824 = vmatprep.subr.bf16.mxu1 %v4265_v0 }
 0x831   :  { %3825 = vmatpush3.bf16.msra.mxu1 %v4106_v3 }
 0x832   :  { %3826 = vmatprep.subr.bf16.mxu1 %v4265_v0 }
 0x835   :  { %3827 = vmatpush3.bf16.msra.mxu1 %v4110_v47 }
 0x836   :  { %3828 = vmatprep.subr.bf16.mxu1 %v4265_v0 }
 0x839   :  { %3829 = vmatpush3.bf16.msra.mxu1 %v4114_v51 }
 0x83a   :  { %3830 = vmatprep.subr.bf16.mxu1 %v4265_v0 }
 0x83d   :  { %3831 = vmatpush3.bf16.msra.mxu1 %v4118_v20 }
 0x83e   :  { %3832 = vmatprep.subr.bf16.mxu1 %v4265_v0 }
 0x841   :  { %3833 = vmatpush3.bf16.msra.mxu1 %v4122_v23 }
 0x842   :  { %3834 = vmatprep.subr.bf16.mxu1 %v4265_v0 }
 0x845   :  { %3835 = vmatpush3.bf16.msra.mxu1 %v4126_v30 }
 0x846   :  { %3836 = vmatprep.subr.bf16.mxu1 %v4265_v0 }
 0x849   :  { %3837 = vmatpush3.bf16.msra.mxu1 %v4130_v11 }
 0x8ff   :  { %v3557_v56 = vpop.f32.mrb[32].mxu1 }
 0x900   :  { %v3558_v59 = vpop.f32.mrb[33].mxu1 }
 0x901   :  { %v3559_v61 = vadd.f32 %v3558_v59, %v3557_v56  ;;  %v3560_v62 = vpop.f32.mrb[34].mxu1  ;;  %v1641_v59 = vld [vmem:[%s5329_s11 + $0x2] sm:$0x7] }
 0x902   :  { %v3561_v63 = vpop.f32.mrb[35].mxu1 }
 0x903   :  { %v1560_v39 = vadd.f32 %v3559_v61, %v3339_v58  ;;  %v3562_v1 = vadd.f32 %v3561_v63, %v3560_v62  ;;  %v1654_v61 = vrot.slane %v1641_v59, %v245_v55  ;;  %v1650_v62 = vrot.slane %v1641_v59, %v4469_v57 }
 0x905   :  { %v1563_v4 = vadd.f32 %v3562_v1, %v3339_v58  ;;  %v1566_v40 = vadd.f32 %v1560_v39, %v4777_v41  ;;  %v4105_v41 = vld [vmem:[%s5328_s3 + $0x1c] ss:$12 sps:$4 sm:$0xff]  }
 0x906   :  { %1788 = vmatprep.subr.bf16.mxu0 %v4105_v41 }
 0x907   :  { %1570 = vadd.xlane.f32.xlu1 %v1566_v40  ;;  %v1567_v43 = vadd.f32 %v1563_v4, %v4779_v35  ;;  %v4103_v35 = vld [vmem:[%s5328_s3 + $0x18] ss:$12 sps:$4 sm:$0xff]  }
 0x908   :  { %1789 = vmatpush1.bf16.msra.mxu0 %v4103_v35 }
 0x909   :  { %1790 = vmatprep.subr.bf16.mxu0 %v4109_v5 }
 0x90b   :  { %1572 = vadd.xlane.f32.xlu1 %v1567_v43 }
 0x90c   :  { %1791 = vmatpush1.bf16.msra.mxu0 %v4107_v6 }
 0x90d   :  { %1792 = vmatprep.subr.bf16.mxu0 %v4113_v45 }
 0x910   :  { %1793 = vmatpush1.bf16.msra.mxu0 %v4111_v48 }
 0x911   :  { %1794 = vmatprep.subr.bf16.mxu0 %v4117_v18 }
 0x914   :  { %1795 = vmatpush1.bf16.msra.mxu0 %v4115_v19 }
 0x915   :  { %1796 = vmatprep.subr.bf16.mxu0 %v4121_v21 }
 0x918   :  { %1797 = vmatpush1.bf16.msra.mxu0 %v4119_v22 }
 0x919   :  { %1798 = vmatprep.subr.bf16.mxu0 %v4125_v27 }
 0x91c   :  { %1799 = vmatpush1.bf16.msra.mxu0 %v4123_v24 }
 0x91d   :  { %1800 = vmatprep.subr.bf16.mxu0 %v4129_v31 }
 0x920   :  { %1801 = vmatpush1.bf16.msra.mxu0 %v4127_v32 }
 0x994   :  { %v1571_v7 = vpop.xlane.xlu1 %1570 }
 0x995   :  { %v1574_v8 = vmul.f32 0.0078125, %v1571_v7  ;;  %v1646_v7 = vrot.slane %v1641_v59, %v4475_v60 }
 0x997   :  { %v1576_v9 = vsub.f32 %v1566_v40, %v1574_v8 }
 0x998   :  { %v1573_v10 = vpop.xlane.xlu1 %1572 }
 0x999   :  { %v1575_v13 = vmul.f32 0.0078125, %v1573_v10  ;;  %v1578_v16 = vmul.f32 %v1576_v9, %v1576_v9 }
 0x99b   :  { %v1577_v2 = vsub.f32 %v1567_v43, %v1575_v13  ;;  %1580 = vadd.xlane.f32.xlu1 %v1578_v16 }
 0x99d   :  { %v1579_v17 = vmul.f32 %v1577_v2, %v1577_v2 }
 0x99f   :  { %1582 = vadd.xlane.f32.xlu1 %v1579_v17 }
 0xa28   :  { %v1581_v33 = vpop.xlane.xlu1 %1580 }
 0xa29   :  { %v1584_v14 = vmul.f32 0.0078125, %v1581_v33 }
 0xa2b   :  { %v1586_v12 = vadd.f32 1e-12, %v1584_v14 }
 0xa2c   :  { %v1583_v15 = vpop.xlane.xlu1 %1582 }
 0xa2d   :  { %4231 = vrsqrt.f32 %v1586_v12  ;;  %v1585_v34 = vmul.f32 0.0078125, %v1583_v15 }
 0xa2f   :  { %v1587_v36 = vadd.f32 1e-12, %v1585_v34 }
 0xa31   :  { %4233 = vrsqrt.f32 %v1587_v36 }
 0xa37   :  { %v4232_v37 = vpop.eup %4231 }
 0xa38   :  { %v1590_v38 = vmul.f32 %v4232_v37, %v1576_v9 }
 0xa3a   :  { %v1598_v52 = vmul.f32 %v3356_v25, %v1590_v38 }
 0xa3b   :  { %v4234_v42 = vpop.eup %4233 }
 0xa3c   :  { %v1591_v28 = vmul.f32 %v4234_v42, %v1577_v2  ;;  %v4930_v53 = vadd.f32 %v3357_v26, %v1598_v52 }
 0xa3e   :  { %v1599_v29 = vmul.f32 %v3356_v25, %v1591_v28 }
 0xa40   :  { %v4932_v56 = vadd.f32 %v3357_v26, %v1599_v29 }
 0xa42   :  { %v1608_v58 = vpack.c.bf16 %v4932_v56, %v4930_v53 }
 0xa44   :  { %1819 = vmatmul.mubr.bf16.vlgmr.msra.gmra.mrb[36].mxu0 %v1608_v58  ;;  %3839 = vmatmul.mubr.bf16.vlgmr.msra.gmra.mrb[36].mxu1 %v1608_v58 }
 0xb17   :  { %v1820_v63 = vpop.f32.mrb[36].mxu0  ;;  %v1863_v39 = vpop.f32.mrb[36].mxu1 }
 0xb18   :  { %v1864_v1 = vadd.f32 %v1863_v39, %v1654_v61  ;;  %v1822_v4 = vpop.f32.mrb[37].mxu0  ;;  %v3840_v40 = vpop.f32.mrb[37].mxu1  ;;  %v1821_v16 = vadd.f32 %v1820_v63, %v1646_v7 }
 0xb19   :  { %v1823_v43 = vadd.f32 %v1822_v4, %v1650_v62  ;;  %v1824_v49 = vpop.f32.mrb[38].mxu0  ;;  %v1866_v50 = vpop.f32.mrb[38].mxu1 }
 0xb1a   :  { %v1892_v46 = vpack.c.bf16 %v1864_v1, %v1864_v1  ;;  %v1826_v41 = vpop.f32.mrb[39].mxu0  ;;  %v3841_v35 = vpop.f32.mrb[39].mxu1  ;;  %v1867_v54 = vadd.f32 %v1866_v50, %v1654_v61  ;;  %v1825_v17 = vadd.f32 %v1824_v49, %v1646_v7  ;;  %v1874_v3 = vmul.f32 1.442695, %v1821_v16  ;;  %v2176_v7 = vld [vmem:[%s5331_s9 + $0x10] sm:$0xff] }
 0xb1b   :  { %v1884_v8 = vmul.f32 1.442695, %v1823_v43  ;;  %v1827_v55 = vadd.f32 %v1826_v41, %v1650_v62  ;;  %v1882_v5 = vadd.f32 1.0, %v1823_v43  ;;  %vm1880_vm9 = vcmp.gt.f32.partialorder %v1823_v43, 0.0 }
 0xb1c   :  { %v1935_v9 = vsel %vm527_vm3, %v1892_v46, 0  ;;  %4000 = vmatprep.subr.msk.bf16.mxu0 %vm527_vm3, %v1892_v46  ;;  %v1893_v10 = vpack.c.bf16 %v1867_v54, %v1867_v54  ;;  %v1876_v6 = vmul.f32 1.442695, %v1825_v17  ;;  %v1872_v33 = vadd.f32 1.0, %v1821_v16  ;;  %v2174_v54 = vld [vmem:[%s5331_s9] sm:$0xff] }
 0xb1d   :  { %4235 = vpow2.f32 %v1884_v8  ;;  %3843 = vmatpush3.bf16.msra.mxu0 %v1935_v9  ;;  %v1886_v13 = vmul.f32 1.442695, %v1827_v55  ;;  %v1883_v48 = vadd.f32 1.0, %v1827_v55  ;;  %vm1881_vm10 = vcmp.gt.f32.partialorder %v1827_v55, 0.0  ;;  %v2177_v8 = vld [vmem:[%s5331_s9 + $0x18] sm:$0xff]  ;;  %v2175_v55 = vld [vmem:[%s5331_s9 + $0x8] sm:$0xff] }
 0xb1e   :  { %3878 = vmatprep.subr.bf16.mxu0 %v4265_v0  ;;  %v2075_v2 = vsel %vm527_vm3, %v1893_v10, 0  ;;  %4001 = vmatprep.subr.msk.bf16.mxu1 %vm527_vm3, %v1893_v10  ;;  %vm1870_vm11 = vcmp.gt.f32.partialorder %v1821_v16, 0.0  ;;  %v1873_v37 = vadd.f32 1.0, %v1825_v17  ;;  %vm1871_vm12 = vcmp.gt.f32.partialorder %v1825_v17, 0.0 }
 0xb1f   :  { %4237 = vpow2.f32 %v1886_v13  ;;  %3861 = vmatpush3.bf16.msra.mxu1 %v2075_v2 }
 0xb20   :  { %3898 = vmatprep.subr.bf16.mxu1 %v4265_v0  ;;  %4239 = vpow2.f32 %v1874_v3 }
 0xb21   :  { %4241 = vpow2.f32 %v1876_v6 }
 0xb27   :  { %v4236_v47 = vpop.eup %4235 }
 0xb28   :  { %v1888_v45 = vsel %vm1880_vm9, %v1882_v5, %v4236_v47 }
 0xb29   :  { %v1890_v51 = vpack.c.bf16 %v1888_v45, %v1888_v45  ;;  %v2320_v18 = vrot.slane %v1888_v45, 4  ;;  %v4238_v19 = vpop.eup %4237 }
 0xb2a   :  { %v1889_v21 = vsel %vm1881_vm10, %v1883_v48, %v4238_v19  ;;  %v4240_v32 = vpop.eup %4239 }
 0xb2b   :  { %v2321_v20 = vadd.f32 %v2320_v18, %v1888_v45  ;;  %1894 = vxpose.xlu1.c.b16.start.end [1/1] (short) %v1890_v51, 128  ;;  %v1891_v22 = vpack.c.bf16 %v1889_v21, %v1889_v21  ;;  %v2326_v23 = vrot.slane %v1889_v21, 4  ;;  %v4242_v15 = vpop.eup %4241  ;;  %v4949_v34 = vsel %vm1870_vm11, %v1872_v33, %v4240_v32  ;;  %v2178_v32 = vld [vmem:[%s5331_s9 + $0x20] sm:$0xff] }
 0xb2c   :  { %v4954_v42 = vsel %vm1871_vm12, %v1873_v37, %v4242_v15 }
 0xb2d   :  { %v2322_v24 = vrot.slane %v2321_v20, 2  ;;  %v2327_v27 = vadd.f32 %v2326_v23, %v1889_v21  ;;  %2034 = vxpose.xlu0.c.b16.start.end [1/1] (short) %v1891_v22, 128 }
 0xb2f   :  { %v2323_v30 = vadd.f32 %v2322_v24, %v2321_v20  ;;  %v2328_v31 = vrot.slane %v2327_v27, 2  ;;  %v2180_v24 = vld [vmem:[%s5331_s9 + $0x30] sm:$0xff] }
 0xb31   :  { %v2324_v11 = vrot.slane %v2323_v30, 1  ;;  %v2329_v14 = vadd.f32 %v2328_v31, %v2327_v27  ;;  %v2181_v27 = vld [vmem:[%s5331_s9 + $0x38] sm:$0xff] }
 0xb33   :  { %v2325_v12 = vadd.f32 %v2324_v11, %v2323_v30  ;;  %v2330_v36 = vrot.slane %v2329_v14, 1  ;;  %v2179_v11 = vld [vmem:[%s5331_s9 + $0x28] sm:$0xff] }
 0xb35   :  { %v4952_v38 = vmul.f32 %v2325_v12, %v4949_v34  ;;  %v2331_v25 = vadd.f32 %v2330_v36, %v2329_v14 }
 0xb37   :  { %v4957_v28 = vmul.f32 %v2331_v25, %v4954_v42 }
 0xb39   :  { %v2334_v52 = vpack.c.bf16 %v4957_v28, %v4952_v38  ;;  %v4141_v38 = vld [vmem:[%s5332_s4 + $0x10] sm:$0xff]   ;;  %v4143_v28 = vld [vmem:[%s5332_s4 + $0x20] sm:$0xff]  }
 0xb91   :  { %v1902_v26 = vpop.trf.xlu1 }
 0xb92   :  { %3844 = vmatprep.mubr.msk.bf16.mxu0 %vm502_vm8, %v1902_v26 }
 0xb93   :  { %v2042_v29 = vpop.trf.xlu0 }
 0xb94   :  { %3862 = vmatprep.mubr.msk.bf16.mxu1 %vm502_vm8, %v2042_v29 }
 0xb95   :  { %v1903_v58 = vpop.trf.xlu1 }
 0xb96   :  { %3845 = vmatmul.mubr.msk.bf16.vlgmr.msra.gmra.mrb[40].mxu0 %vm502_vm8, %v1903_v58 }
 0xb97   :  { %v2043_v59 = vpop.trf.xlu0 }
 0xb98   :  { %3863 = vmatmul.mubr.msk.bf16.vlgmr.msra.gmra.mrb[40].mxu1 %vm502_vm8, %v2043_v59 }
 0xb99   :  { %v1904_v61 = vpop.trf.xlu1 }
 0xb9a   :  { %3848 = vmatprep.mubr.msk.bf16.mxu0 %vm502_vm8, %v1904_v61 }
 0xb9b   :  { %v2044_v62 = vpop.trf.xlu0 }
 0xb9c   :  { %3866 = vmatprep.mubr.msk.bf16.mxu1 %vm502_vm8, %v2044_v62 }
 0xb9d   :  { %v1905_v63 = vpop.trf.xlu1 }
 0xb9e   :  { %3849 = vmatmul.mubr.msk.bf16.gmra.mrb[44].mxu0 %vm502_vm8, %v1905_v63 }
 0xb9f   :  { %v2045_v39 = vpop.trf.xlu0 }
 0xba0   :  { %3867 = vmatmul.mubr.msk.bf16.gmra.mrb[44].mxu1 %vm502_vm8, %v2045_v39 }
 0xba1   :  { %v1906_v1 = vpop.trf.xlu1 }
 0xba2   :  { %3852 = vmatprep.mubr.msk.bf16.mxu0 %vm502_vm8, %v1906_v1 }
 0xba3   :  { %v2046_v4 = vpop.trf.xlu0 }
 0xba4   :  { %3870 = vmatprep.mubr.msk.bf16.mxu1 %vm502_vm8, %v2046_v4 }
 0xba5   :  { %v1907_v40 = vpop.trf.xlu1 }
 0xba6   :  { %3853 = vmatmul.mubr.msk.bf16.gmra.mrb[48].mxu0 %vm502_vm8, %v1907_v40 }
 0xba7   :  { %v2047_v43 = vpop.trf.xlu0 }
 0xba8   :  { %3871 = vmatmul.mubr.msk.bf16.gmra.mrb[48].mxu1 %vm502_vm8, %v2047_v43  ;;  %v2184_v43 = vld [vmem:[%s5331_s9 + $0x50] sm:$0xff] }
 0xba9   :  { %v1908_v49 = vpop.trf.xlu1 }
 0xbaa   :  { %3856 = vmatprep.mubr.msk.bf16.mxu0 %vm502_vm8, %v1908_v49  ;;  %v2185_v49 = vld [vmem:[%s5331_s9 + $0x58] sm:$0xff] }
 0xbab   :  { %v2048_v50 = vpop.trf.xlu0 }
 0xbac   :  { %3874 = vmatprep.mubr.msk.bf16.mxu1 %vm502_vm8, %v2048_v50 }
 0xbad   :  { %v1909_v46 = vpop.trf.xlu1 }
 0xbae   :  { %3857 = vmatmul.mubr.msk.bf16.gmra.mrb[52].mxu0 %vm502_vm8, %v1909_v46 }
 0xbaf   :  { %3894 = vmatprep.mubr.msk.bf16.mxu0 %vm4266_vm0, %v4265_v0  ;;  %v2049_v41 = vpop.trf.xlu0 }
 0xbb0   :  { %3875 = vmatmul.mubr.msk.bf16.gmra.mrb[52].mxu1 %vm502_vm8, %v2049_v41  ;;  %v2182_v41 = vld [vmem:[%s5331_s9 + $0x40] sm:$0xff] }
 0xbb1   :  { %3914 = vmatprep.mubr.msk.bf16.mxu1 %vm4266_vm0, %v4265_v0 }
 0xc69   :  { %v3846_v35 = vpop.f32.mrb[40].mxu0 }
 0xc6a   :  { %v1971_v9 = vpop.f32.mrb[41].mxu0  ;;  %v2192_v13 = vmul.f32 %v3846_v35, %v2176_v7  ;;  %v2183_v35 = vld [vmem:[%s5331_s9 + $0x48] sm:$0xff] }
 0xc6b   :  { %v3847_v10 = vpop.f32.mrb[42].mxu0  ;;  %v3864_v2 = vpop.f32.mrb[40].mxu1  ;;  %v2190_v3 = vmul.f32 %v2174_v54, %v1971_v9 }
 0xc6c   :  { %v2193_v16 = vmul.f32 %v3847_v10, %v2177_v8  ;;  %v1974_v17 = vpop.f32.mrb[43].mxu0  ;;  %v2208_v5 = vmul.f32 %v3864_v2, %v2176_v7  ;;  %v2111_v47 = vpop.f32.mrb[41].mxu1 }
 0xc6d   :  { %v2191_v6 = vmul.f32 %v2175_v55, %v1974_v17  ;;  %v2206_v48 = vmul.f32 %v2174_v54, %v2111_v47  ;;  %v3865_v51 = vpop.f32.mrb[42].mxu1 }
 0xc6e   :  { %v2223_v45 = vpack.c.bf16 %v2193_v16, %v2192_v13  ;;  %v2209_v19 = vmul.f32 %v3865_v51, %v2177_v8  ;;  %v2114_v20 = vpop.f32.mrb[43].mxu1 }
 0xc6f   :  { %v2222_v18 = vpack.c.bf16 %v2191_v6, %v2190_v3  ;;  %v2207_v21 = vmul.f32 %v2175_v55, %v2114_v20  ;;  %v2189_v20 = vld [vmem:[%s5331_s9 + $0x78] sm:$0xff] }
 0xc70   :  { %v2231_v22 = vpack.c.bf16 %v2209_v19, %v2208_v5  ;;  %v2188_v19 = vld [vmem:[%s5331_s9 + $0x70] sm:$0xff] }
 0xc71   :  { %v3850_v23 = vpop.f32.mrb[44].mxu0  ;;  %3879 = vmatpush3.bf16.msra.mxu0 %v2222_v18  ;;  %v2230_v30 = vpack.c.bf16 %v2207_v21, %v2206_v48 }
 0xc72   :  { %v1987_v31 = vpop.f32.mrb[45].mxu0  ;;  %3880 = vmatprep.subr.bf16.mxu0 %v4265_v0  ;;  %v2196_v14 = vmul.f32 %v3850_v23, %v2180_v24  ;;  %v2186_v23 = vld [vmem:[%s5331_s9 + $0x60] sm:$0xff] }
 0xc73   :  { %v3851_v33 = vpop.f32.mrb[46].mxu0  ;;  %v3868_v15 = vpop.f32.mrb[44].mxu1  ;;  %3899 = vmatpush3.bf16.msra.mxu1 %v2230_v30  ;;  %v2194_v37 = vmul.f32 %v2178_v32, %v1987_v31 }
 0xc74   :  { %v2197_v12 = vmul.f32 %v3851_v33, %v2181_v27  ;;  %v1990_v36 = vpop.f32.mrb[47].mxu0  ;;  %v2212_v25 = vmul.f32 %v3868_v15, %v2180_v24  ;;  %v2127_v29 = vpop.f32.mrb[45].mxu1  ;;  %3900 = vmatprep.subr.bf16.mxu1 %v4265_v0  ;;  %v2187_v24 = vld [vmem:[%s5331_s9 + $0x68] sm:$0xff] }
 0xc75   :  { %v2195_v26 = vmul.f32 %v2179_v11, %v1990_v36  ;;  %3881 = vmatpush3.bf16.msra.mxu0 %v2223_v45  ;;  %v2210_v59 = vmul.f32 %v2178_v32, %v2127_v29  ;;  %v3869_v61 = vpop.f32.mrb[46].mxu1 }
 0xc76   :  { %v2225_v58 = vpack.c.bf16 %v2197_v12, %v2196_v14  ;;  %3882 = vmatprep.subr.bf16.mxu0 %v4265_v0  ;;  %v2213_v63 = vmul.f32 %v3869_v61, %v2181_v27  ;;  %v2130_v39 = vpop.f32.mrb[47].mxu1 }
 0xc77   :  { %v2224_v62 = vpack.c.bf16 %v2195_v26, %v2194_v37  ;;  %v2211_v1 = vmul.f32 %v2179_v11, %v2130_v39  ;;  %3901 = vmatpush3.bf16.msra.mxu1 %v2231_v22  ;;  %v2238_v39 = vpack.c.bf16 %v4949_v34, %v4949_v34  ;;  %v4133_v34 = vld [vmem:[%s5330_s10 + $0x10] sm:$0xff]  }
 0xc78   :  { %v2233_v4 = vpack.c.bf16 %v2213_v63, %v2212_v25  ;;  %3902 = vmatprep.subr.bf16.mxu1 %v4265_v0  ;;  %v4131_v63 = vld [vmem:[%s5330_s10] sm:$0xff]  }
 0xc79   :  { %v3854_v40 = vpop.f32.mrb[48].mxu0  ;;  %3883 = vmatpush3.bf16.msra.mxu0 %v2224_v62  ;;  %v2232_v50 = vpack.c.bf16 %v2211_v1, %v2210_v59  ;;  %v2239_v1 = vpack.c.bf16 %v4954_v42, %v4954_v42  ;;  %v4134_v42 = vld [vmem:[%s5330_s10 + $0x18] sm:$0xff]  }
 0xc7a   :  { %v2003_v46 = vpop.f32.mrb[49].mxu0  ;;  %3884 = vmatprep.subr.bf16.mxu0 %v4265_v0  ;;  %v2200_v8 = vmul.f32 %v3854_v40, %v2184_v43  ;;  %v4135_v40 = vld [vmem:[%s5330_s10 + $0x20] sm:$0xff]  }
 0xc7b   :  { %v3855_v7 = vpop.f32.mrb[50].mxu0  ;;  %v3872_v54 = vpop.f32.mrb[48].mxu1  ;;  %3903 = vmatpush3.bf16.msra.mxu1 %v2232_v50  ;;  %v2198_v10 = vmul.f32 %v2182_v41, %v2003_v46  ;;  %v4138_v50 = vld [vmem:[%s5330_s10 + $0x38] sm:$0xff]   ;;  %v4139_v46 = vld [vmem:[%s5332_s4] sm:$0xff]  }
 0xc7c   :  { %v2201_v9 = vmul.f32 %v3855_v7, %v2185_v49  ;;  %v2006_v55 = vpop.f32.mrb[51].mxu0  ;;  %v2216_v13 = vmul.f32 %v3872_v54, %v2184_v43  ;;  %v2143_v2 = vpop.f32.mrb[49].mxu1  ;;  %3904 = vmatprep.subr.bf16.mxu1 %v4265_v0  ;;  %v4136_v43 = vld [vmem:[%s5330_s10 + $0x28] sm:$0xff]   ;;  %v4146_v7 = vld [vmem:[%s5332_s4 + $0x38] sm:$0xff]  }
 0xc7d   :  { %v2199_v16 = vmul.f32 %v2183_v35, %v2006_v55  ;;  %3885 = vmatpush3.bf16.msra.mxu0 %v2225_v58  ;;  %v2214_v3 = vmul.f32 %v2182_v41, %v2143_v2  ;;  %v3873_v5 = vpop.f32.mrb[50].mxu1  ;;  %v4140_v41 = vld [vmem:[%s5332_s4 + $0x8] sm:$0xff]  }
 0xc7e   :  { %v2227_v17 = vpack.c.bf16 %v2201_v9, %v2200_v8  ;;  %3886 = vmatprep.subr.bf16.mxu0 %v4265_v0  ;;  %v2217_v47 = vmul.f32 %v3873_v5, %v2185_v49  ;;  %v2146_v45 = vpop.f32.mrb[51].mxu1  ;;  %v4137_v49 = vld [vmem:[%s5330_s10 + $0x30] sm:$0xff]  }
 0xc7f   :  { %v2226_v6 = vpack.c.bf16 %v2199_v16, %v2198_v10  ;;  %v2215_v48 = vmul.f32 %v2183_v35, %v2146_v45  ;;  %3905 = vmatpush3.bf16.msra.mxu1 %v2233_v4  ;;  %v4132_v4 = vld [vmem:[%s5330_s10 + $0x8] sm:$0xff]   ;;  %v4145_v35 = vld [vmem:[%s5332_s4 + $0x30] sm:$0xff]  }
 0xc80   :  { %v2235_v51 = vpack.c.bf16 %v2217_v47, %v2216_v13  ;;  %3906 = vmatprep.subr.bf16.mxu1 %v4265_v0 }
 0xc81   :  { %v3858_v18 = vpop.f32.mrb[52].mxu0  ;;  %3887 = vmatpush3.bf16.msra.mxu0 %v2226_v6  ;;  %v2234_v21 = vpack.c.bf16 %v2215_v48, %v2214_v3 }
 0xc82   :  { %v2019_v22 = vpop.f32.mrb[53].mxu0  ;;  %3888 = vmatprep.subr.bf16.mxu0 %v4265_v0  ;;  %v2204_v30 = vmul.f32 %v3858_v18, %v2188_v19 }
 0xc83   :  { %v3859_v27 = vpop.f32.mrb[54].mxu0  ;;  %v3876_v32 = vpop.f32.mrb[52].mxu1  ;;  %3907 = vmatpush3.bf16.msra.mxu1 %v2234_v21  ;;  %v2202_v33 = vmul.f32 %v2186_v23, %v2019_v22 }
 0xc84   :  { %v2205_v31 = vmul.f32 %v3859_v27, %v2189_v20  ;;  %v2022_v11 = vpop.f32.mrb[55].mxu0  ;;  %v2220_v14 = vmul.f32 %v3876_v32, %v2188_v19  ;;  %v2159_v15 = vpop.f32.mrb[53].mxu1  ;;  %3908 = vmatprep.subr.bf16.mxu1 %v4265_v0 }
 0xc85   :  { %v2203_v12 = vmul.f32 %v2187_v24, %v2022_v11  ;;  %3889 = vmatpush3.bf16.msra.mxu0 %v2227_v17  ;;  %v2218_v37 = vmul.f32 %v2186_v23, %v2159_v15  ;;  %v3877_v25 = vpop.f32.mrb[54].mxu1 }
 0xc86   :  { %v2229_v36 = vpack.c.bf16 %v2205_v31, %v2204_v30  ;;  %3890 = vmatprep.subr.bf16.mxu0 %v4265_v0  ;;  %v2221_v29 = vmul.f32 %v3877_v25, %v2189_v20  ;;  %v2162_v58 = vpop.f32.mrb[55].mxu1  ;;  %v3406_v31 = vld [vmem:[%s5329_s11 + $0x5] ss:$0 sm:$0xff]  ;;  %v4147_v25 = vld [vmem:[%s5333_s5] ss:$8 sps:$4 sm:$0xff]  }
 0xc87   :  { %v2228_v26 = vpack.c.bf16 %v2203_v12, %v2202_v33  ;;  %v2219_v59 = vmul.f32 %v2187_v24, %v2162_v58  ;;  %3909 = vmatpush3.bf16.msra.mxu1 %v2235_v51 }
 0xc88   :  { %v2237_v61 = vpack.c.bf16 %v2221_v29, %v2220_v14  ;;  %3910 = vmatprep.subr.bf16.mxu1 %v4265_v0  ;;  %v4152_v29 = vld [vmem:[%s5333_s5 + $0x14] ss:$8 sps:$4 sm:$0xff]  }
 0xc89   :  { %3891 = vmatpush3.bf16.msra.mxu0 %v2228_v26  ;;  %v2236_v62 = vpack.c.bf16 %v2219_v59, %v2218_v37  ;;  %v4149_v26 = vld [vmem:[%s5333_s5 + $0x4] ss:$8 sps:$4 sm:$0xff]  }
 0xc8a   :  { %3892 = vmatprep.subr.bf16.mxu0 %v4265_v0 }
 0xc8b   :  { %3911 = vmatpush3.bf16.msra.mxu1 %v2236_v62 }
 0xc8c   :  { %3912 = vmatprep.subr.bf16.mxu1 %v4265_v0 }
 0xc8d   :  { %3893 = vmatpush3.bf16.msra.mxu0 %v2229_v36 }
 0xc8e   :  { %3918 = vmatprep.subr.bf16.mxu0 %v4265_v0 }
 0xc8f   :  { %3913 = vmatpush3.bf16.msra.mxu1 %v2237_v61 }
 0xc90   :  { %3895 = vmatmul.mubr.bf16.vlgmr.msra.gmra.mrb[56].mxu0 %v2238_v39  ;;  %3938 = vmatprep.subr.bf16.mxu1 %v4265_v0 }
 0xc91   :  { %3919 = vmatpush3.bf16.msra.mxu0 %v4131_v63  ;;  %3934 = vmatprep.mubr.msk.bf16.mxu0 %vm4266_vm0, %v4265_v0 }
 0xc92   :  { %3920 = vmatprep.subr.bf16.mxu0 %v4265_v0  ;;  %3915 = vmatmul.mubr.bf16.vlgmr.msra.gmra.mrb[56].mxu1 %v2239_v1 }
 0xc93   :  { %3954 = vmatprep.mubr.msk.bf16.mxu1 %vm4266_vm0, %v4265_v0  ;;  %3939 = vmatpush3.bf16.msra.mxu1 %v4139_v46  ;;  %v4162_v46 = vld [vmem:[%s5333_s5 + $0x50] ss:$8 sps:$4 sm:$0xff]  }
 0xc94   :  { %3940 = vmatprep.subr.bf16.mxu1 %v4265_v0 }
 0xc95   :  { %3921 = vmatpush3.bf16.msra.mxu0 %v4132_v4  ;;  %v4155_v4 = vld [vmem:[%s5333_s5 + $0x24] ss:$8 sps:$4 sm:$0xff]  }
 0xc96   :  { %3922 = vmatprep.subr.bf16.mxu0 %v4265_v0 }
 0xc97   :  { %3941 = vmatpush3.bf16.msra.mxu1 %v4140_v41  ;;  %v4165_v41 = vld [vmem:[%s5333_s5 + $0x60] ss:$8 sps:$4 sm:$0xff]  }
 0xc98   :  { %3942 = vmatprep.subr.bf16.mxu1 %v4265_v0 }
 0xc99   :  { %3923 = vmatpush3.bf16.msra.mxu0 %v4133_v34  ;;  %v4153_v34 = vld [vmem:[%s5333_s5 + $0x20] ss:$8 sps:$4 sm:$0xff]  }
 0xc9a   :  { %3924 = vmatprep.subr.bf16.mxu0 %v4265_v0 }
 0xc9b   :  { %3943 = vmatpush3.bf16.msra.mxu1 %v4141_v38  ;;  %v4167_v38 = vld [vmem:[%s5333_s5 + $0x64] ss:$8 sps:$4 sm:$0xff]  }
 0xc9c   :  { %3944 = vmatprep.subr.bf16.mxu1 %v4265_v0 }
 0xc9d   :  { %3925 = vmatpush3.bf16.msra.mxu0 %v4134_v42  ;;  %v4158_v42 = vld [vmem:[%s5333_s5 + $0x34] ss:$8 sps:$4 sm:$0xff]  }
 0xc9e   :  { %3926 = vmatprep.subr.bf16.mxu0 %v4265_v0 }
 0xca1   :  { %3927 = vmatpush3.bf16.msra.mxu0 %v4135_v40  ;;  %v4156_v40 = vld [vmem:[%s5333_s5 + $0x30] ss:$8 sps:$4 sm:$0xff]  }
 0xca2   :  { %3928 = vmatprep.subr.bf16.mxu0 %v4265_v0 }
 0xca5   :  { %3929 = vmatpush3.bf16.msra.mxu0 %v4136_v43  ;;  %v4161_v43 = vld [vmem:[%s5333_s5 + $0x44] ss:$8 sps:$4 sm:$0xff]  }
 0xca6   :  { %3930 = vmatprep.subr.bf16.mxu0 %v4265_v0 }
 0xca9   :  { %3931 = vmatpush3.bf16.msra.mxu0 %v4137_v49  ;;  %v4159_v49 = vld [vmem:[%s5333_s5 + $0x40] ss:$8 sps:$4 sm:$0xff]  }
 0xcaa   :  { %3932 = vmatprep.subr.bf16.mxu0 %v4265_v0 }
 0xcad   :  { %3933 = vmatpush3.bf16.msra.mxu0 %v4138_v50  ;;  %v4164_v50 = vld [vmem:[%s5333_s5 + $0x54] ss:$8 sps:$4 sm:$0xff]  }
 0xcae   :  { %2714 = vmatprep.subr.bf16.mxu0 %v4149_v26 }
 0xcb0   :  { %3935 = vmatmul.mubr.bf16.vlgmr.msra.gmra.mrb[60].mxu0 %v2334_v52  ;;  %v4144_v52 = vld [vmem:[%s5332_s4 + $0x28] sm:$0xff]  }
 0xcb1   :  { %2746 = vmatprep.mubr.bf16.mxu0 %v4267_v44  ;;  %v4142_v44 = vld [vmem:[%s5332_s4 + $0x18] sm:$0xff]   ;;  %2715 = vmatpush1.bf16.msra.mxu0 %v4147_v25 }
 0xcb2   :  { %3945 = vmatpush3.bf16.msra.mxu1 %v4142_v44  ;;  %2716 = vmatprep.subr.bf16.mxu0 %v4152_v29  ;;  %v4170_v44 = vld [vmem:[%s5333_s5 + $0x74] ss:$8 sps:$4 sm:$0xff]  }
 0xcb3   :  { %3946 = vmatprep.subr.bf16.mxu1 %v4265_v0 }
 0xcb6   :  { %3947 = vmatpush3.bf16.msra.mxu1 %v4143_v28  ;;  %v4168_v28 = vld [vmem:[%s5333_s5 + $0x70] ss:$8 sps:$4 sm:$0xff]  }
 0xcb7   :  { %3948 = vmatprep.subr.bf16.mxu1 %v4265_v0 }
 0xcba   :  { %3949 = vmatpush3.bf16.msra.mxu1 %v4144_v52 }
 0xcbb   :  { %3950 = vmatprep.subr.bf16.mxu1 %v4265_v0 }
 0xcbe   :  { %3951 = vmatpush3.bf16.msra.mxu1 %v4145_v35 }
 0xcbf   :  { %3952 = vmatprep.subr.bf16.mxu1 %v4265_v0 }
 0xcc2   :  { %3953 = vmatpush3.bf16.msra.mxu1 %v4146_v7 }
 0xd63   :  { %v2274_v8 = vpop.f32.mrb[56].mxu0 }
 0xd64   :  { %v3896_v9 = vpop.f32.mrb[57].mxu0 }
 0xd65   :  { %v2277_v54 = vpop.f32.mrb[58].mxu0  ;;  %v2314_v55 = vpop.f32.mrb[56].mxu1 }
 0xd66   :  { %v3897_v10 = vpop.f32.mrb[59].mxu0  ;;  %v3916_v13 = vpop.f32.mrb[57].mxu1 }
 0xd67   :  { %v2317_v16 = vpop.f32.mrb[58].mxu1  ;;  %v3415_v13 = vld [vmem:[%s5329_s11 + $0x6] ss:$0 sm:$0xff] }
 0xd68   :  { %v3917_v2 = vpop.f32.mrb[59].mxu1 }
 0xd83   :  { %v2433_v17 = vpop.f32.mrb[60].mxu0 }
 0xd84   :  { %v2434_v3 = vadd.f32 1e-30, %v2433_v17  ;;  %v3936_v5 = vpop.f32.mrb[61].mxu0 }
 0xd85   :  { %v2436_v6 = vpop.f32.mrb[62].mxu0 }
 0xd86   :  { %4243 = vrcp.f32 %v2434_v3  ;;  %v2437_v47 = vadd.f32 1e-30, %v2436_v6  ;;  %v3937_v45 = vpop.f32.mrb[63].mxu0 }
 0xd88   :  { %4245 = vrcp.f32 %v2437_v47 }
 0xd90   :  { %v4244_v48 = vpop.eup %4243 }
 0xd91   :  { %v2442_v51 = vmul.f32 %v4244_v48, %v2434_v3  ;;  %v3416_v3 = vld [vmem:[%s5329_s11 + $0x7] ss:$0 sm:$0xff] }
 0xd92   :  { %v4246_v18 = vpop.eup %4245 }
 0xd93   :  { %v2444_v19 = vsub.f32 2.0, %v2442_v51  ;;  %v2443_v20 = vmul.f32 %v4246_v18, %v2437_v47  ;;  %v4172_v51 = vld [vmem:[%s5334_s6] sm:$0xff]  }
 0xd95   :  { %v2446_v21 = vmul.f32 %v4244_v48, %v2444_v19  ;;  %v2445_v22 = vsub.f32 2.0, %v2443_v20  ;;  %v4171_v48 = vld [vmem:[%s5334_s6 + $0x40] sm:$0xff]   ;;  %v4174_v19 = vld [vmem:[%s5334_s6 + $0x8] sm:$0xff]   ;;  %v4175_v20 = vld [vmem:[%s5334_s6 + $0x50] sm:$0xff]  }
 0xd96   :  { %3626 = vmatprep.subr.bf16.mxu1 %v4171_v48 }
 0xd97   :  { %v2448_v23 = vmul.f32 %v2446_v21, %v2274_v8  ;;  %v2447_v24 = vmul.f32 %v4246_v18, %v2445_v22  ;;  %v4173_v18 = vld [vmem:[%s5334_s6 + $0x48] sm:$0xff]   ;;  %v4176_v21 = vld [vmem:[%s5334_s6 + $0x10] sm:$0xff]   ;;  %v4177_v22 = vld [vmem:[%s5334_s6 + $0x58] sm:$0xff]  }
 0xd99   :  { %v2449_v27 = vmul.f32 %v2447_v24, %v2314_v55  ;;  %v4179_v24 = vld [vmem:[%s5334_s6 + $0x60] sm:$0xff]  }
 0xd9b   :  { %v2450_v30 = vpack.c.bf16 %v2449_v27, %v2448_v23  ;;  %v4178_v23 = vld [vmem:[%s5334_s6 + $0x18] sm:$0xff]   ;;  %v4180_v27 = vld [vmem:[%s5334_s6 + $0x20] sm:$0xff]  }
 0xd9d   :  { %3955 = vmatmul.mubr.bf16.vlgmr.msra.gmra.mrb[60].mxu1 %v2450_v30  ;;  %v4181_v30 = vld [vmem:[%s5334_s6 + $0x68] sm:$0xff]  }
 0xd9e   :  { %3627 = vmatpush3.bf16.msra.mxu1 %v4172_v51 }
 0xd9f   :  { %3628 = vmatprep.subr.bf16.mxu1 %v4173_v18 }
 0xda2   :  { %3629 = vmatpush3.bf16.msra.mxu1 %v4174_v19 }
 0xda3   :  { %3630 = vmatprep.subr.bf16.mxu1 %v4175_v20 }
 0xda6   :  { %3631 = vmatpush3.bf16.msra.mxu1 %v4176_v21 }
 0xda7   :  { %3632 = vmatprep.subr.bf16.mxu1 %v4177_v22 }
 0xdaa   :  { %3633 = vmatpush3.bf16.msra.mxu1 %v4178_v23 }
 0xdab   :  { %3634 = vmatprep.subr.bf16.mxu1 %v4179_v24 }
 0xdae   :  { %3635 = vmatpush3.bf16.msra.mxu1 %v4180_v27 }
 0xdaf   :  { %3636 = vmatprep.subr.bf16.mxu1 %v4181_v30  ;;  %v3433_v30 = vld [vmem:[%s5329_s11 + $0xa] ss:$0 sm:$0xff] }
 0xe70   :  { %v2556_v32 = vpop.f32.mrb[60].mxu1 }
 0xe71   :  { %v2557_v11 = vadd.f32 %v3406_v31, %v2556_v32  ;;  %v3956_v33 = vpop.f32.mrb[61].mxu1  ;;  %v4183_v32 = vld [vmem:[%s5334_s6 + $0x70] sm:$0xff]  }
 0xe72   :  { %v2559_v14 = vpop.f32.mrb[62].mxu1  ;;  %v4185_v33 = vld [vmem:[%s5334_s6 + $0x78] sm:$0xff]  }
 0xe73   :  { %v2560_v12 = vadd.f32 %v3406_v31, %v2559_v14  ;;  %v3957_v15 = vpop.f32.mrb[63].mxu1  ;;  %v2563_v36 = vadd.f32 %v2557_v11, %v4930_v53  ;;  %v4150_v53 = vld [vmem:[%s5333_s5 + $0x10] ss:$8 sps:$4 sm:$0xff]   ;;  %v4182_v31 = vld [vmem:[%s5334_s6 + $0x28] sm:$0xff]  }
 0xe74   :  { %2717 = vmatpush1.bf16.msra.mxu0 %v4150_v53  ;;  %3637 = vmatpush3.bf16.msra.mxu1 %v4182_v31  ;;  %v4184_v11 = vld [vmem:[%s5334_s6 + $0x30] sm:$0xff]   ;;  %v4186_v14 = vld [vmem:[%s5334_s6 + $0x38] sm:$0xff]  }
 0xe75   :  { %2567 = vadd.xlane.f32.xlu0 %v2563_v36  ;;  %v2564_v37 = vadd.f32 %v2560_v12, %v4932_v56  ;;  %2718 = vmatprep.subr.bf16.mxu0 %v4155_v4  ;;  %v2622_v12 = vld [vmem:[%s5329_s11 + $0x8] sm:$0x3] }
 0xe76   :  { %3638 = vmatprep.subr.bf16.mxu1 %v4183_v32  ;;  %v2627_v15 = vrot.slane %v2622_v12, %v4475_v60 }
 0xe77   :  { %2569 = vadd.xlane.f32.xlu1 %v2564_v37 }
 0xe78   :  { %2719 = vmatpush1.bf16.msra.mxu0 %v4153_v34  ;;  %3639 = vmatpush3.bf16.msra.mxu1 %v4184_v11 }
 0xe79   :  { %2720 = vmatprep.subr.bf16.mxu0 %v4158_v42  ;;  %3640 = vmatprep.subr.bf16.mxu1 %v4185_v33 }
 0xe7c   :  { %2721 = vmatpush1.bf16.msra.mxu0 %v4156_v40  ;;  %3641 = vmatpush3.bf16.msra.mxu1 %v4186_v14 }
 0xe7d   :  { %2722 = vmatprep.subr.bf16.mxu0 %v4161_v43  ;;  %3978 = vmatprep.subr.bf16.mxu1 %v4265_v0 }
 0xe80   :  { %2723 = vmatpush1.bf16.msra.mxu0 %v4159_v49 }
 0xe81   :  { %2724 = vmatprep.subr.bf16.mxu0 %v4164_v50 }
 0xe84   :  { %2725 = vmatpush1.bf16.msra.mxu0 %v4162_v46 }
 0xe85   :  { %2726 = vmatprep.subr.bf16.mxu0 %v4167_v38 }
 0xe88   :  { %2727 = vmatpush1.bf16.msra.mxu0 %v4165_v41 }
 0xe89   :  { %2728 = vmatprep.subr.bf16.mxu0 %v4170_v44 }
 0xe8c   :  { %2729 = vmatpush1.bf16.msra.mxu0 %v4168_v28 }
 0xe8d   :  { %3958 = vmatprep.subr.bf16.mxu0 %v4265_v0 }
 0xf02   :  { %v2568_v56 = vpop.xlane.xlu0 %2567 }
 0xf03   :  { %v2571_v58 = vmul.f32 0.0078125, %v2568_v56 }
 0xf04   :  { %v2570_v59 = vpop.xlane.xlu1 %2569 }
 0xf05   :  { %v2573_v61 = vsub.f32 %v2563_v36, %v2571_v58  ;;  %v2572_v62 = vmul.f32 0.0078125, %v2570_v59  ;;  %v2631_v36 = vrot.slane %v2622_v12, %v4469_v57 }
 0xf07   :  { %v2574_v63 = vsub.f32 %v2564_v37, %v2572_v62  ;;  %v2575_v39 = vmul.f32 %v2573_v61, %v2573_v61 }
 0xf09   :  { %2577 = vadd.xlane.f32.xlu0 %v2575_v39  ;;  %v2576_v1 = vmul.f32 %v2574_v63, %v2574_v63 }
 0xf0d   :  { %2579 = vadd.xlane.f32.xlu0 %v2576_v1 }
 0xf96   :  { %v2578_v52 = vpop.xlane.xlu0 %2577 }
 0xf97   :  { %v2581_v35 = vmul.f32 0.0078125, %v2578_v52 }
 0xf99   :  { %v2583_v7 = vadd.f32 1e-12, %v2581_v35 }
 0xf9a   :  { %v2580_v8 = vpop.xlane.xlu0 %2579 }
 0xf9b   :  { %4247 = vrsqrt.f32 %v2583_v7  ;;  %v2582_v9 = vmul.f32 0.0078125, %v2580_v8 }
 0xf9d   :  { %v2584_v54 = vadd.f32 1e-12, %v2582_v9 }
 0xf9f   :  { %4249 = vrsqrt.f32 %v2584_v54 }
 0xfa5   :  { %v4248_v55 = vpop.eup %4247 }
 0xfa6   :  { %v2587_v10 = vmul.f32 %v4248_v55, %v2573_v61 }
 0xfa8   :  { %v2595_v17 = vmul.f32 %v3415_v13, %v2587_v10 }
 0xfa9   :  { %v4250_v16 = vpop.eup %4249 }
 0xfaa   :  { %v2588_v2 = vmul.f32 %v4250_v16, %v2574_v63  ;;  %v5179_v6 = vadd.f32 %v3416_v3, %v2595_v17 }
 0xfac   :  { %v2596_v5 = vmul.f32 %v3415_v13, %v2588_v2 }
 0xfae   :  { %v5181_v47 = vadd.f32 %v3416_v3, %v2596_v5 }
 0xfb0   :  { %v2605_v45 = vpack.c.bf16 %v5181_v47, %v5179_v6 }
 0xfb2   :  { %2747 = vmatmul.mubr.bf16.vlgmr.msra.gmra.mrb[64].mxu0 %v2605_v45 }
 0xfb3   :  { %3974 = vmatprep.mubr.msk.bf16.mxu0 %vm4266_vm0, %v4265_v0 }
0x1085   :  { %v2748_v37 = vpop.f32.mrb[64].mxu0 }
0x1086   :  { %v2749_v25 = vadd.f32 %v2748_v37, %v2627_v15  ;;  %v2750_v26 = vpop.f32.mrb[65].mxu0 }
0x1087   :  { %v2751_v29 = vadd.f32 %v2750_v26, %v2631_v36  ;;  %v2752_v53 = vpop.f32.mrb[66].mxu0 }
0x1088   :  { %v2761_v56 = vmul.f32 0.044715, %v2749_v25  ;;  %v2753_v58 = vadd.f32 %v2752_v53, %v2627_v15  ;;  %v2754_v59 = vpop.f32.mrb[67].mxu0  ;;  %v2757_v10 = vmul.f32 0.5, %v2749_v25  ;;  %v4187_v53 = vld [vmem:[%s5335_s7] sm:$0xff]  }
0x1089   :  { %v2762_v61 = vmul.f32 0.044715, %v2751_v29  ;;  %v2755_v62 = vadd.f32 %v2754_v59, %v2631_v36  ;;  %v2758_v2 = vmul.f32 0.5, %v2751_v29  ;;  %3959 = vmatpush3.bf16.msra.mxu0 %v4187_v53  ;;  %v4192_v59 = vld [vmem:[%s5335_s7 + $0x28] sm:$0xff]  }
0x108a   :  { %v2765_v63 = vmul.f32 %v2761_v56, %v2749_v25  ;;  %v2763_v39 = vmul.f32 0.044715, %v2753_v58  ;;  %v2759_v13 = vmul.f32 0.5, %v2753_v58  ;;  %3960 = vmatprep.subr.bf16.mxu0 %v4265_v0  ;;  %v4190_v56 = vld [vmem:[%s5335_s7 + $0x18] sm:$0xff]  }
0x108b   :  { %v2766_v1 = vmul.f32 %v2762_v61, %v2751_v29  ;;  %v2764_v4 = vmul.f32 0.044715, %v2755_v62  ;;  %v2760_v17 = vmul.f32 0.5, %v2755_v62  ;;  %v4193_v61 = vld [vmem:[%s5335_s7 + $0x30] sm:$0xff]  }
0x108c   :  { %v2769_v34 = vmul.f32 %v2765_v63, %v2749_v25  ;;  %v2767_v42 = vmul.f32 %v2763_v39, %v2753_v58  ;;  %v4195_v63 = vld [vmem:[%s5336_s8] sm:$0xff]   ;;  %v4196_v39 = vld [vmem:[%s5336_s8 + $0x8] sm:$0xff]  }
0x108d   :  { %v2770_v40 = vmul.f32 %v2766_v1, %v2751_v29  ;;  %v2768_v60 = vmul.f32 %v2764_v4, %v2755_v62  ;;  %v4197_v1 = vld [vmem:[%s5336_s8 + $0x10] sm:$0xff]   ;;  %v4198_v4 = vld [vmem:[%s5336_s8 + $0x18] sm:$0xff]  }
0x108e   :  { %v2773_v43 = vadd.f32 %v2769_v34, %v2749_v25  ;;  %v2771_v57 = vmul.f32 %v2767_v42, %v2753_v58 }
0x108f   :  { %v2772_v49 = vmul.f32 %v2768_v60, %v2755_v62  ;;  %v2774_v50 = vadd.f32 %v2770_v40, %v2751_v29 }
0x1090   :  { %v2777_v46 = vmul.f32 0.7978846, %v2773_v43  ;;  %v2775_v41 = vadd.f32 %v2771_v57, %v2753_v58  ;;  %v4191_v58 = vld [vmem:[%s5335_s7 + $0x20] sm:$0xff]  }
0x1091   :  { %v2776_v38 = vadd.f32 %v2772_v49, %v2755_v62  ;;  %v2778_v44 = vmul.f32 0.7978846, %v2774_v50  ;;  %v4194_v62 = vld [vmem:[%s5335_s7 + $0x38] sm:$0xff]   ;;  %v3450_v50 = vld [vmem:[%s5329_s11 + $0xb] ss:$0 sm:$0xff] }
0x1092   :  { %4251 = vtanh.f32 %v2777_v46  ;;  %v2779_v28 = vmul.f32 0.7978846, %v2775_v41  ;;  %v3451_v41 = vld [vmem:[%s5329_s11 + $0xc] ss:$0 sm:$0xff] }
0x1093   :  { %v2780_v52 = vmul.f32 0.7978846, %v2776_v38  ;;  %4253 = vtanh.f32 %v2778_v44 }
0x1094   :  { %4255 = vtanh.f32 %v2779_v28 }
0x1095   :  { %4257 = vtanh.f32 %v2780_v52 }
0x109c   :  { %v4252_v35 = vpop.eup %4251 }
0x109d   :  { %v4254_v7 = vpop.eup %4253  ;;  %v2785_v8 = vadd.f32 1.0, %v4252_v35 }
0x109e   :  { %v4256_v9 = vpop.eup %4255  ;;  %v2786_v54 = vadd.f32 1.0, %v4254_v7 }
0x109f   :  { %v4258_v55 = vpop.eup %4257  ;;  %v2787_v16 = vadd.f32 1.0, %v4256_v9  ;;  %v2789_v5 = vmul.f32 %v2785_v8, %v2757_v10 }
0x10a0   :  { %v2788_v3 = vadd.f32 1.0, %v4258_v55  ;;  %v2790_v48 = vmul.f32 %v2786_v54, %v2758_v2  ;;  %v4199_v2 = vld [vmem:[%s5336_s8 + $0x20] sm:$0xff]  }
0x10a1   :  { %v2791_v45 = vmul.f32 %v2787_v16, %v2759_v13 }
0x10a2   :  { %v2792_v51 = vmul.f32 %v2788_v3, %v2760_v17  ;;  %v4200_v17 = vld [vmem:[%s5336_s8 + $0x28] sm:$0xff]   ;;  %v4201_v3 = vld [vmem:[%s5336_s8 + $0x30] sm:$0xff]  }
0x10a3   :  { %v2793_v18 = vpack.c.bf16 %v2791_v45, %v2789_v5  ;;  %v4202_v5 = vld [vmem:[%s5336_s8 + $0x38] sm:$0xff]   ;;  %v3452_v45 = vld [vmem:[%s5329_s11 + $0xd] ss:$0 sm:$0xff] }
0x10a4   :  { %v2794_v19 = vpack.c.bf16 %v2792_v51, %v2790_v48 }
0x10a6   :  { %2962 = vmatprep.mubr.bf16.mxu1 %v2794_v19 }
0x10a7   :  { %2963 = vmatmul.mubr.bf16.vlgmr.msra.gmra.mrb[64].mxu1 %v2793_v18 }
0x10a8   :  { %3994 = vmatprep.mubr.msk.bf16.mxu1 %vm4266_vm0, %v4265_v0  ;;  %3979 = vmatpush3.bf16.msra.mxu1 %v4195_v63 }
0x10a9   :  { %3980 = vmatprep.subr.bf16.mxu1 %v4265_v0 }
0x10ac   :  { %3981 = vmatpush3.bf16.msra.mxu1 %v4196_v39 }
0x10ad   :  { %3982 = vmatprep.subr.bf16.mxu1 %v4265_v0 }
0x10b0   :  { %3983 = vmatpush3.bf16.msra.mxu1 %v4197_v1 }
0x10b1   :  { %3984 = vmatprep.subr.bf16.mxu1 %v4265_v0 }
0x10b4   :  { %3985 = vmatpush3.bf16.msra.mxu1 %v4198_v4 }
0x10b5   :  { %3986 = vmatprep.subr.bf16.mxu1 %v4265_v0 }
0x10b8   :  { %3987 = vmatpush3.bf16.msra.mxu1 %v4199_v2 }
0x10b9   :  { %3988 = vmatprep.subr.bf16.mxu1 %v4265_v0 }
0x10bc   :  { %3989 = vmatpush3.bf16.msra.mxu1 %v4200_v17 }
0x10bd   :  { %3990 = vmatprep.subr.bf16.mxu1 %v4265_v0 }
0x10c0   :  { %3991 = vmatpush3.bf16.msra.mxu1 %v4201_v3 }
0x10c1   :  { %3992 = vmatprep.subr.bf16.mxu1 %v4265_v0 }
0x10c4   :  { %3993 = vmatpush3.bf16.msra.mxu1 %v4202_v5 }
0x117a   :  { %v3642_v20 = vpop.f32.mrb[64].mxu1 }
0x117b   :  { %v3643_v21 = vpop.f32.mrb[65].mxu1 }
0x117c   :  { %v3644_v22 = vadd.f32 %v3643_v21, %v3642_v20  ;;  %v3645_v23 = vpop.f32.mrb[66].mxu1 }
0x117d   :  { %v3646_v24 = vpop.f32.mrb[67].mxu1 }
0x117e   :  { %v3647_v27 = vadd.f32 %v3646_v24, %v3645_v23  ;;  %v2965_v32 = vadd.f32 %v3644_v22, %v3433_v30 }
0x1180   :  { %v2968_v31 = vadd.f32 %v3647_v27, %v3433_v30  ;;  %v2971_v33 = vadd.f32 %v2965_v32, %v5179_v6  ;;  %v4188_v6 = vld [vmem:[%s5335_s7 + $0x8] sm:$0xff]  }
0x1181   :  { %3961 = vmatpush3.bf16.msra.mxu0 %v4188_v6 }
0x1182   :  { %v2972_v11 = vadd.f32 %v2968_v31, %v5181_v47  ;;  %3962 = vmatprep.subr.bf16.mxu0 %v4265_v0  ;;  %v4189_v47 = vld [vmem:[%s5335_s7 + $0x10] sm:$0xff]  }
0x1184   :  { %2977 = vadd.xlane.f32.xlu0 %v2972_v11 }
0x1185   :  { %3963 = vmatpush3.bf16.msra.mxu0 %v4189_v47 }
0x1186   :  { %3964 = vmatprep.subr.bf16.mxu0 %v4265_v0 }
0x1188   :  { %2975 = vadd.xlane.f32.xlu0 %v2971_v33 }
0x1189   :  { %3965 = vmatpush3.bf16.msra.mxu0 %v4190_v56 }
0x118a   :  { %3966 = vmatprep.subr.bf16.mxu0 %v4265_v0 }
0x118d   :  { %3967 = vmatpush3.bf16.msra.mxu0 %v4191_v58 }
0x118e   :  { %3968 = vmatprep.subr.bf16.mxu0 %v4265_v0 }
0x1191   :  { %3969 = vmatpush3.bf16.msra.mxu0 %v4192_v59 }
0x1192   :  { %3970 = vmatprep.subr.bf16.mxu0 %v4265_v0 }
0x1195   :  { %3971 = vmatpush3.bf16.msra.mxu0 %v4193_v61 }
0x1196   :  { %3972 = vmatprep.subr.bf16.mxu0 %v4265_v0  ;;  %v3461_v0 = vld [vmem:[%s5329_s11 + $0xe] ss:$0 sm:$0xff] }
0x1199   :  { %3973 = vmatpush3.bf16.msra.mxu0 %v4194_v62 }
0x1211   :  { %v2978_v14 = vpop.xlane.xlu0 %2977 }
0x1212   :  { %v2980_v12 = vmul.f32 0.0078125, %v2978_v14 }
0x1214   :  { %v2982_v15 = vsub.f32 %v2972_v11, %v2980_v12 }
0x1215   :  { %v2976_v36 = vpop.xlane.xlu0 %2975 }
0x1216   :  { %v2979_v37 = vmul.f32 0.0078125, %v2976_v36  ;;  %v2984_v25 = vmul.f32 %v2982_v15, %v2982_v15 }
0x1218   :  { %v2981_v26 = vsub.f32 %v2971_v33, %v2979_v37  ;;  %2987 = vadd.xlane.f32.xlu1 %v2984_v25 }
0x121a   :  { %v2983_v29 = vmul.f32 %v2981_v26, %v2981_v26 }
0x121c   :  { %2985 = vadd.xlane.f32.xlu0 %v2983_v29 }
0x12a5   :  { %v2988_v34 = vpop.xlane.xlu1 %2987 }
0x12a6   :  { %v2990_v42 = vmul.f32 0.0078125, %v2988_v34 }
0x12a8   :  { %v2992_v40 = vadd.f32 1e-12, %v2990_v42 }
0x12a9   :  { %v2986_v60 = vpop.xlane.xlu0 %2985 }
0x12aa   :  { %4259 = vrsqrt.f32 %v2992_v40  ;;  %v2989_v43 = vmul.f32 0.0078125, %v2986_v60 }
0x12ac   :  { %v2991_v57 = vadd.f32 1e-12, %v2989_v43 }
0x12ae   :  { %4261 = vrsqrt.f32 %v2991_v57 }
0x12b4   :  { %v4260_v49 = vpop.eup %4259 }
0x12b5   :  { %v2996_v46 = vmul.f32 %v4260_v49, %v2982_v15 }
0x12b7   :  { %v3004_v38 = vmul.f32 %v3450_v50, %v2996_v46 }
0x12b8   :  { %v4262_v44 = vpop.eup %4261 }
0x12b9   :  { %v2995_v28 = vmul.f32 %v4262_v44, %v2981_v26  ;;  %v3012_v52 = vadd.f32 %v3451_v41, %v3004_v38 }
0x12bb   :  { %v3003_v35 = vmul.f32 %v3450_v50, %v2995_v28  ;;  %v3014_v7 = vpack.c.bf16 %v3012_v52, %v3012_v52 }
0x12bd   :  { %v3011_v8 = vadd.f32 %v3451_v41, %v3003_v35  ;;  %v3041_v9 = vunpack.c.l.b16 %v3014_v7 }
0x12bf   :  { %v3013_v54 = vpack.c.bf16 %v3011_v8, %v3011_v8  ;;  %v3042_v10 = vrot.slane %v3041_v9, 7 }
0x12c1   :  { %v3040_v55 = vunpack.c.l.b16 %v3013_v54 }
0x12c3   :  { %v3044_v13 = vsel %vm3043_vm13, %v3042_v10, %v3040_v55 }
0x12c4   :  { %v3045_v16 = vpack.c.b16 %v3044_v13, %v3044_v13 }
0x12c6   :  { %3975 = vmatmul.mubr.bf16.vlgmr.msra.gmra.mrb[68].mxu0 %v3045_v16 }
0x1399   :  { %v3129_v48 = vpop.f32.mrb[68].mxu0 }
0x139a   :  { %v3130_v51 = vadd.f32 %v3452_v45, %v3129_v48  ;;  %v3976_v18 = vpop.f32.mrb[69].mxu0 }
0x139b   :  { %v3132_v19 = vpop.f32.mrb[70].mxu0 }
0x139c   :  { %4263 = vtanh.f32 %v3130_v51  ;;  %v3977_v20 = vpop.f32.mrb[71].mxu0 }
0x13a6   :  { %v4264_v21 = vpop.eup %4263 }
0x13a7   :  { %v3136_v22 = vpack.c.bf16 %v4264_v21, %v4264_v21 }
0x13a9   :  { %3995 = vmatmul.mubr.bf16.vlgmr.msra.gmra.mrb[68].mxu1 %v3136_v22 }
0x147c   :  { %v3242_v23 = vpop.f32.mrb[68].mxu1 }
0x147d   :  { %v3243_v24 = vadd.f32 %v3461_v0, %v3242_v23  ;;  %v3996_v27 = vpop.f32.mrb[69].mxu1 }
0x147e   :  { %v3245_v30 = vpop.f32.mrb[70].mxu1 }
0x147f   :  { %3249 = vst.msk [vmem:[%s5337_s12] sm:$0x3] %vm3248_vm14, %v3243_v24  ;;  %v3997_v31 = vpop.f32.mrb[71].mxu1 }

</bundles_post_ra>
